<compile_context>
chip_gen: v5e
topology: v5e:2x2
jax: 0.10.0
libtpu: 0.0.40
codegen_flags: <defaults>
</compile_context>

<pallas_src>
import functools

import jax
import jax.numpy as jnp
from jax.experimental import pallas as pl
from jax.experimental.pallas import tpu as pltpu


# ------------------------------ in-kernel helpers ----------------------------


def _ln_f32(x, g_ref, b_ref, eps):
    """LayerNorm of an f32 2-D tile; gamma/beta are (1, D) refs."""
    mu = jnp.mean(x, axis=-1, keepdims=True)
    var = jnp.mean((x - mu) ** 2, axis=-1, keepdims=True)
    xn = (x - mu) * jax.lax.rsqrt(var + eps)
    return xn * g_ref[...].astype(jnp.float32) + b_ref[...].astype(jnp.float32)


def _attention_heads(q, k, v, bias, num_heads, scale):
    """Per-head scaled-dot-product attention on 2-D (L, D) tiles.

    q: (Lq, D), k/v: (Lk, D), bias: (Lq_or_1, Lk) additive mask.
    Returns (Lq, D) with heads re-merged along the lane dim (lane-dense).
    """
    Lq, D = q.shape
    hd = D // num_heads
    outs = []
    for h in range(num_heads):  # static unroll; num_heads is a Python int
        sl = slice(h * hd, (h + 1) * hd)
        qh, kh, vh = q[:, sl], k[:, sl], v[:, sl]
        s = jax.lax.dot_general(
            qh, kh, (((1,), (1,)), ((), ())),
            preferred_element_type=jnp.float32) * scale + bias
        s = s - jnp.max(s, axis=-1, keepdims=True)
        p = jnp.exp(s)
        # TODO(synk): approx=True moves the reciprocal onto the (idle) EUP slot,
        # but loosens the numerical self-check; keep the exact reciprocal here.
        p = p * pl.reciprocal(jnp.sum(p, axis=-1, keepdims=True), approx=False)
        outs.append(jnp.dot(p, vh, preferred_element_type=jnp.float32))
    return jnp.concatenate(outs, axis=-1)


# --------------------------------- kernels -----------------------------------


def _ln_linear_kernel(x_ref, g_ref, b_ref, w_ref, bias_ref, o_ref, *, use_ln, eps):
    x = x_ref[...].astype(jnp.float32)
    if use_ln:
        x = _ln_f32(x, g_ref, b_ref, eps)
    y = jnp.dot(x, w_ref[...].astype(jnp.float32),
                preferred_element_type=jnp.float32)
    y = y + bias_ref[...].astype(jnp.float32)
    o_ref[...] = y.astype(o_ref.dtype)


def _ln_ffn_kernel(x_ref, g_ref, b_ref, w1_ref, b1_ref, w2_ref, b2_ref, o_ref, *, eps):
    x = x_ref[...].astype(jnp.float32)
    xn = _ln_f32(x, g_ref, b_ref, eps)
    h = jnp.dot(xn, w1_ref[...].astype(jnp.float32),
                preferred_element_type=jnp.float32)
    h = jnp.maximum(h + b1_ref[...].astype(jnp.float32), 0.0)
    y = jnp.dot(h, w2_ref[...].astype(jnp.float32),
                preferred_element_type=jnp.float32)
    y = y + b2_ref[...].astype(jnp.float32)
    o_ref[...] = (x + y).astype(o_ref.dtype)        # pre-LN residual fused


def _self_attn_kernel(qkv_ref, mask_ref, res_ref, wo_ref, bo_ref, o_ref,
                      *, num_heads, scale, embed_dim):
    D = embed_dim
    qkv = qkv_ref[0].astype(jnp.float32)            # (Lq, 3D)
    q, k, v = qkv[:, :D], qkv[:, D:2 * D], qkv[:, 2 * D:]
    bias = (1.0 - mask_ref[0].astype(jnp.float32)) * -1e9
    o = _attention_heads(q, k, v, bias, num_heads, scale)
    y = jnp.dot(o, wo_ref[...].astype(jnp.float32),
                preferred_element_type=jnp.float32)
    y = y + bo_ref[...].astype(jnp.float32)
    o_ref[0] = (res_ref[0].astype(jnp.float32) + y).astype(o_ref.dtype)


def _cross_attn_kernel(q_ref, kv_ref, mask_ref, res_ref, wo_ref, bo_ref, o_ref,
                       *, num_heads, scale, embed_dim):
    D = embed_dim
    q = q_ref[0].astype(jnp.float32)                # (Lq, D)
    kv = kv_ref[0].astype(jnp.float32)              # (Lk, 2D)
    k, v = kv[:, :D], kv[:, D:]
    bias = (1.0 - mask_ref[0].astype(jnp.float32)) * -1e9
    o = _attention_heads(q, k, v, bias, num_heads, scale)
    y = jnp.dot(o, wo_ref[...].astype(jnp.float32),
                preferred_element_type=jnp.float32)
    y = y + bo_ref[...].astype(jnp.float32)
    o_ref[0] = (res_ref[0].astype(jnp.float32) + y).astype(o_ref.dtype)


def _ln_kernel(x_ref, g_ref, b_ref, o_ref, *, eps):
    o_ref[...] = _ln_f32(x_ref[...].astype(jnp.float32),
                         g_ref, b_ref, eps).astype(o_ref.dtype)


# ------------------------------ kernel wrappers -------------------------------


def _row_tile(m, target=512):
    """Row-tile size: full array for small M, else a multiple-of-8 divisor <= target."""
    if m <= target:
        return m
    for tm in range(target, 7, -1):
        if m % tm == 0 and tm % 8 == 0:
            return tm
    return m


_PAR = pltpu.CompilerParams(dimension_semantics=("parallel",))


def ln_linear(x2d, w, b, gamma=None, beta=None, eps=1e-6):
    """(optional LayerNorm) + x @ w + b, tiled over rows."""
    M, D = x2d.shape
    N = w.shape[1]
    use_ln = gamma is not None
    if gamma is None:
        gamma = jnp.ones((D,), x2d.dtype)
        beta = jnp.zeros((D,), x2d.dtype)
    tm = _row_tile(M)
    return pl.pallas_call(
        functools.partial(_ln_linear_kernel, use_ln=use_ln, eps=eps),
        out_shape=jax.ShapeDtypeStruct((M, N), x2d.dtype),
        grid=(M // tm,),
        in_specs=[
            pl.BlockSpec((tm, D), lambda i: (i, 0)),
            pl.BlockSpec((1, D), lambda i: (0, 0)),
            pl.BlockSpec((1, D), lambda i: (0, 0)),
            pl.BlockSpec((D, N), lambda i: (0, 0)),
            pl.BlockSpec((1, N), lambda i: (0, 0)),
        ],
        out_specs=pl.BlockSpec((tm, N), lambda i: (i, 0)),
        compiler_params=_PAR,
    )(x2d, gamma.reshape(1, D), beta.reshape(1, D), w, b.reshape(1, N))


def ln_ffn_block(x, gamma, beta, w1, b1, w2, b2, eps=1e-6):
    """x + Linear2(ReLU(Linear1(LN(x)))), fully fused; FF intermediate stays in VMEM."""
    B, L, D = x.shape
    FF = w1.shape[1]
    M = B * L
    tm = _row_tile(M)
    y = pl.pallas_call(
        functools.partial(_ln_ffn_kernel, eps=eps),
        out_shape=jax.ShapeDtypeStruct((M, D), x.dtype),
        grid=(M // tm,),
        in_specs=[
            pl.BlockSpec((tm, D), lambda i: (i, 0)),
            pl.BlockSpec((1, D), lambda i: (0, 0)),
            pl.BlockSpec((1, D), lambda i: (0, 0)),
            pl.BlockSpec((D, FF), lambda i: (0, 0)),
            pl.BlockSpec((1, FF), lambda i: (0, 0)),
            pl.BlockSpec((FF, D), lambda i: (0, 0)),
            pl.BlockSpec((1, D), lambda i: (0, 0)),
        ],
        out_specs=pl.BlockSpec((tm, D), lambda i: (i, 0)),
        compiler_params=_PAR,
    )(x.reshape(M, D), gamma.reshape(1, D), beta.reshape(1, D),
      w1, b1.reshape(1, FF), w2, b2.reshape(1, D))
    return y.reshape(B, L, D)


def self_attention(x, qkv, mask, wo, bo, num_heads):
    """x + Wo . MHA(qkv) — all heads of one batch element per grid step."""
    B, Lq, D = x.shape
    Lq_m, Lk = mask.shape[1], mask.shape[2]
    scale = float(D // num_heads) ** -0.5
    return pl.pallas_call(
        functools.partial(_self_attn_kernel, num_heads=num_heads,
                          scale=scale, embed_dim=D),
        out_shape=jax.ShapeDtypeStruct((B, Lq, D), x.dtype),
        grid=(B,),
        in_specs=[
            pl.BlockSpec((1, Lq, 3 * D), lambda b: (b, 0, 0)),
            pl.BlockSpec((1, Lq_m, Lk), lambda b: (b, 0, 0)),
            pl.BlockSpec((1, Lq, D), lambda b: (b, 0, 0)),
            pl.BlockSpec((D, D), lambda b: (0, 0)),
            pl.BlockSpec((1, D), lambda b: (0, 0)),
        ],
        out_specs=pl.BlockSpec((1, Lq, D), lambda b: (b, 0, 0)),
        compiler_params=_PAR,
    )(qkv, mask, x, wo, bo.reshape(1, D))


def cross_attention(x, q, kv, mask, wo, bo, num_heads):
    """x + Wo . MHA(q, k, v) with k|v packed along the lane dim."""
    B, Lq, D = x.shape
    Lk = kv.shape[1]
    Lq_m = mask.shape[1]
    scale = float(D // num_heads) ** -0.5
    return pl.pallas_call(
        functools.partial(_cross_attn_kernel, num_heads=num_heads,
                          scale=scale, embed_dim=D),
        out_shape=jax.ShapeDtypeStruct((B, Lq, D), x.dtype),
        grid=(B,),
        in_specs=[
            pl.BlockSpec((1, Lq, D), lambda b: (b, 0, 0)),
            pl.BlockSpec((1, Lk, 2 * D), lambda b: (b, 0, 0)),
            pl.BlockSpec((1, Lq_m, Lk), lambda b: (b, 0, 0)),
            pl.BlockSpec((1, Lq, D), lambda b: (b, 0, 0)),
            pl.BlockSpec((D, D), lambda b: (0, 0)),
            pl.BlockSpec((1, D), lambda b: (0, 0)),
        ],
        out_specs=pl.BlockSpec((1, Lq, D), lambda b: (b, 0, 0)),
        compiler_params=_PAR,
    )(q, kv, mask, x, wo, bo.reshape(1, D))


def layer_norm(x2d, gamma, beta, eps=1e-6):
    M, D = x2d.shape
    tm = _row_tile(M)
    return pl.pallas_call(
        functools.partial(_ln_kernel, eps=eps),
        out_shape=jax.ShapeDtypeStruct((M, D), x2d.dtype),
        grid=(M // tm,),
        in_specs=[
            pl.BlockSpec((tm, D), lambda i: (i, 0)),
            pl.BlockSpec((1, D), lambda i: (0, 0)),
            pl.BlockSpec((1, D), lambda i: (0, 0)),
        ],
        out_specs=pl.BlockSpec((tm, D), lambda i: (i, 0)),
        compiler_params=_PAR,
    )(x2d, gamma.reshape(1, D), beta.reshape(1, D))


# ---------------------------- decoder forward pass ----------------------------


def decoder_forward(params, trg_inputs, trg_mask, encoder_out, encoder_mask,
                    num_heads):
    B, Lt, D = trg_inputs.shape
    Ls = encoder_out.shape[1]
    # masks: (B, 1, Lq_or_1, Lk) -> drop the singleton head dim; the additive
    # -1e9 bias is built in-kernel (no (B*H, Lq, Lk) materialization).
    trg_mask2 = trg_mask.reshape(B, trg_mask.shape[2], Lt)
    enc_mask2 = encoder_mask.reshape(B, encoder_mask.shape[2], Ls)
    enc2d = encoder_out.reshape(B * Ls, D)

    x = trg_inputs  # dropout is identity (eval mode / p = 0)
    for layer in params["layers"]:
        sa, ea, ff = layer["self_att"], layer["enc_att"], layer["ffn"]

        # --- self-attention block: x = x + Wo . MHA(LN0(x)) ---
        wqkv = jnp.concatenate([sa["wq"], sa["wk"], sa["wv"]], axis=1)
        bqkv = jnp.concatenate([sa["bq"], sa["bk"], sa["bv"]], axis=0)
        qkv = ln_linear(x.reshape(B * Lt, D), wqkv, bqkv,
                        gamma=layer["ln0_g"], beta=layer["ln0_b"]
                        ).reshape(B, Lt, 3 * D)
        x = self_attention(x, qkv, trg_mask2, sa["wo"], sa["bo"], num_heads)

        # --- encoder-decoder attention block: x = x + Wo . MHA(LN1(x), enc, enc) ---
        q = ln_linear(x.reshape(B * Lt, D), ea["wq"], ea["bq"],
                      gamma=layer["ln1_g"], beta=layer["ln1_b"]
                      ).reshape(B, Lt, D)
        wkv = jnp.concatenate([ea["wk"], ea["wv"]], axis=1)
        bkv = jnp.concatenate([ea["bk"], ea["bv"]], axis=0)
        kv = ln_linear(enc2d, wkv, bkv).reshape(B, Ls, 2 * D)   # no LN on enc_out
        x = cross_attention(x, q, kv, enc_mask2, ea["wo"], ea["bo"], num_heads)

        # --- position-wise FFN block (LN2 + w1 + ReLU + w2 + residual, fused) ---
        x = ln_ffn_block(x, layer["ln2_g"], layer["ln2_b"],
                         ff["w1"], ff["b1"], ff["w2"], ff["b2"])

    return layer_norm(x.reshape(B * Lt, D),
                      params["last_ln_g"], params["last_ln_b"]).reshape(B, Lt, D)


# ------------------------- pure-JAX reference (check) -------------------------


def _ref_ln(x, g, b, eps=1e-6):
    mu = jnp.mean(x, -1, keepdims=True)
    var = jnp.mean((x - mu) ** 2, -1, keepdims=True)
    return (x - mu) * jax.lax.rsqrt(var + eps) * g + b


def _ref_mha(xq, xk, xv, mask, p, H):
    B, Lq, D = xq.shape
    Lk = xk.shape[1]
    hd = D // H
    q = (xq @ p["wq"] + p["bq"]).reshape(B, Lq, H, hd).transpose(0, 2, 1, 3)
    k = (xk @ p["wk"] + p["bk"]).reshape(B, Lk, H, hd).transpose(0, 2, 1, 3)
    v = (xv @ p["wv"] + p["bv"]).reshape(B, Lk, H, hd).transpose(0, 2, 1, 3)
    s = jnp.einsum("bhqd,bhkd->bhqk", q, k) * (float(hd) ** -0.5)
    s = s + (1.0 - mask.astype(jnp.float32)) * -1e9
    p_att = jax.nn.softmax(s, axis=-1)
    o = jnp.einsum("bhqk,bhkd->bhqd", p_att, v).transpose(0, 2, 1, 3).reshape(B, Lq, D)
    return o @ p["wo"] + p["bo"]


def _ref_forward(params, x, trg_mask, enc_out, enc_mask, H):
    for layer in params["layers"]:
        r = x
        xn = _ref_ln(x, layer["ln0_g"], layer["ln0_b"])
        x = r + _ref_mha(xn, xn, xn, trg_mask, layer["self_att"], H)
        r = x
        xn = _ref_ln(x, layer["ln1_g"], layer["ln1_b"])
        x = r + _ref_mha(xn, enc_out, enc_out, enc_mask, layer["enc_att"], H)
        r = x
        xn = _ref_ln(x, layer["ln2_g"], layer["ln2_b"])
        h = jnp.maximum(xn @ layer["ffn"]["w1"] + layer["ffn"]["b1"], 0.0)
        x = r + (h @ layer["ffn"]["w2"] + layer["ffn"]["b2"])
    return _ref_ln(x, params["last_ln_g"], params["last_ln_b"])


# --------------------------------- param init ---------------------------------


def init_params(key, num_layers, embed_dim, ff_dim):
    def lin(k, fan_in, fan_out):
        k1, k2 = jax.random.split(k)
        w = jax.random.normal(k1, (fan_in, fan_out), jnp.float32) * 0.05
        b = jax.random.normal(k2, (fan_out,), jnp.float32) * 0.01
        return w, b

    layers = []
    for _ in range(num_layers):
        key, *ks = jax.random.split(key, 11)
        wq, bq = lin(ks[0], embed_dim, embed_dim)
        wk, bk = lin(ks[1], embed_dim, embed_dim)
        wv, bv = lin(ks[2], embed_dim, embed_dim)
        wo, bo = lin(ks[3], embed_dim, embed_dim)
        self_att = dict(wq=wq, bq=bq, wk=wk, bk=bk, wv=wv, bv=bv, wo=wo, bo=bo)
        wq, bq = lin(ks[4], embed_dim, embed_dim)
        wk, bk = lin(ks[5], embed_dim, embed_dim)
        wv, bv = lin(ks[6], embed_dim, embed_dim)
        wo, bo = lin(ks[7], embed_dim, embed_dim)
        enc_att = dict(wq=wq, bq=bq, wk=wk, bk=bk, wv=wv, bv=bv, wo=wo, bo=bo)
        w1, b1 = lin(ks[8], embed_dim, ff_dim)
        w2, b2 = lin(ks[9], ff_dim, embed_dim)
        layers.append(dict(
            self_att=self_att, enc_att=enc_att,
            ffn=dict(w1=w1, b1=b1, w2=w2, b2=b2),
            ln0_g=jnp.ones((embed_dim,), jnp.float32), ln0_b=jnp.zeros((embed_dim,), jnp.float32),
            ln1_g=jnp.ones((embed_dim,), jnp.float32), ln1_b=jnp.zeros((embed_dim,), jnp.float32),
            ln2_g=jnp.ones((embed_dim,), jnp.float32), ln2_b=jnp.zeros((embed_dim,), jnp.float32),
        ))
    return dict(
        layers=layers,
        last_ln_g=jnp.ones((embed_dim,), jnp.float32),
        last_ln_b=jnp.zeros((embed_dim,), jnp.float32),
    )


# ------------------------------------ main -------------------------------------


if __name__ == "__main__":
    num_layers, num_heads, embed_dim, ff_dim = 2, 4, 32, 64
    B, Lt, Ls = 2, 8, 10

    key = jax.random.PRNGKey(0)
    kx, ke, kp = jax.random.split(key, 3)

    trg_inputs = jax.random.normal(kx, (B, Lt, embed_dim), jnp.float32)
    encoder_out = jax.random.normal(ke, (B, Ls, embed_dim), jnp.float32)

    # causal target mask (B, 1, Lt, Lt): 1 = attend, 0 = masked
    trg_mask = jnp.tril(jnp.ones((Lt, Lt), jnp.float32))[None, None]
    trg_mask = jnp.broadcast_to(trg_mask, (B, 1, Lt, Lt))
    # encoder padding mask (B, 1, 1, Ls): last 2 source positions of batch 1 padded
    enc_valid = jnp.array([[1.0] * Ls, [1.0] * (Ls - 2) + [0.0] * 2], jnp.float32)
    encoder_mask = enc_valid[:, None, None, :]

    params = init_params(kp, num_layers, embed_dim, ff_dim)

    fwd = jax.jit(functools.partial(decoder_forward, num_heads=num_heads))
    out = jax.block_until_ready(
        fwd(params, trg_inputs, trg_mask, encoder_out, encoder_mask))

    ref = _ref_forward(params, trg_inputs, trg_mask, encoder_out,
                       encoder_mask, num_heads)
    assert out.shape == (B, Lt, embed_dim)
    # Both paths run f32 math on the MXU with default precision; 1e-3 leaves
    # headroom for bf16-pass truncation order differences between XLA and Mosaic.
    err = float(jnp.max(jnp.abs(out - ref)))
    assert err < 1e-3, f"mismatch vs pure-JAX reference: max abs err = {err}"

    print("KERNEL_OK")
</pallas_src>

<mosaic_0001>
module attributes {stable_mosaic.version = 11 : i64} {
  func.func @_ln_linear_kernel(%arg0: i32, %arg1: memref<20x32xf32, #tpu.memory_space<vmem>>, %arg2: memref<1x32xf32, #tpu.memory_space<vmem>>, %arg3: memref<1x32xf32, #tpu.memory_space<vmem>>, %arg4: memref<32x64xf32, #tpu.memory_space<vmem>>, %arg5: memref<1x64xf32, #tpu.memory_space<vmem>>, %arg6: memref<20x64xf32, #tpu.memory_space<vmem>>) attributes {dimension_semantics = [#tpu.dimension_semantics<parallel>], iteration_bounds = array<i64: 1>, scalar_prefetch = 0 : i64, scratch_operands = 0 : i64, tpu.core_type = #tpu.core_type<tc>, window_params = [{transform_indices = @transform_0, window_bounds = array<i64: 20, 32>}, {pipeline_mode = #tpu.pipeline_mode<synchronous>, transform_indices = @transform_1, window_bounds = array<i64: 1, 32>}, {pipeline_mode = #tpu.pipeline_mode<synchronous>, transform_indices = @transform_2, window_bounds = array<i64: 1, 32>}, {pipeline_mode = #tpu.pipeline_mode<synchronous>, transform_indices = @transform_3, window_bounds = array<i64: 32, 64>}, {pipeline_mode = #tpu.pipeline_mode<synchronous>, transform_indices = @transform_4, window_bounds = array<i64: 1, 64>}, {transform_indices = @transform_5, window_bounds = array<i64: 20, 64>}]} {
    %c0 = arith.constant 0 : index
    %c0_0 = arith.constant 0 : index
    %0 = vector.load %arg1[%c0, %c0_0] : memref<20x32xf32, #tpu.memory_space<vmem>>, vector<20x32xf32>
    %c0_1 = arith.constant 0 : index
    %c0_2 = arith.constant 0 : index
    %1 = vector.load %arg4[%c0_1, %c0_2] : memref<32x64xf32, #tpu.memory_space<vmem>>, vector<32x64xf32>
    %cst = arith.constant dense<0.000000e+00> : vector<20x64xf32>
    %2 = tpu.matmul %0, %1, %cst {dimension_numbers = #tpu.dot_dimension_numbers<[1], [0], [0], [1], [0, 0, 1, 1], [], []>} : vector<20x32xf32>, vector<32x64xf32>, vector<20x64xf32> -> vector<20x64xf32>
    %c0_3 = arith.constant 0 : index
    %c0_4 = arith.constant 0 : index
    %3 = vector.load %arg5[%c0_3, %c0_4] : memref<1x64xf32, #tpu.memory_space<vmem>>, vector<1x64xf32>
    %4 = vector.broadcast %3 : vector<1x64xf32> to vector<20x64xf32>
    %5 = arith.addf %2, %4 : vector<20x64xf32>
    %c0_5 = arith.constant 0 : index
    %c0_6 = arith.constant 0 : index
    %6 = vector.load %arg6[%c0_5, %c0_6] : memref<20x64xf32, #tpu.memory_space<vmem>>, vector<20x64xf32>
    tpu.vector_store %arg6[%c0_5, %c0_6], %5 {strides = array<i32>} : memref<20x64xf32, #tpu.memory_space<vmem>>, vector<20x64xf32>,
    return
  }
  func.func @transform_0(%arg0: i32) -> (i32, i32) {
    %c0_i32 = arith.constant 0 : i32
    %c0_i32_0 = arith.constant 0 : i32
    return %arg0, %c0_i32 : i32, i32
  }
  func.func @transform_1(%arg0: i32) -> (i32, i32) {
    %c0_i32 = arith.constant 0 : i32
    %c0_i32_0 = arith.constant 0 : i32
    %c0_i32_1 = arith.constant 0 : i32
    return %c0_i32, %c0_i32_0 : i32, i32
  }
  func.func @transform_2(%arg0: i32) -> (i32, i32) {
    %c0_i32 = arith.constant 0 : i32
    %c0_i32_0 = arith.constant 0 : i32
    %c0_i32_1 = arith.constant 0 : i32
    return %c0_i32, %c0_i32_0 : i32, i32
  }
  func.func @transform_3(%arg0: i32) -> (i32, i32) {
    %c0_i32 = arith.constant 0 : i32
    %c0_i32_0 = arith.constant 0 : i32
    %c0_i32_1 = arith.constant 0 : i32
    return %c0_i32, %c0_i32_0 : i32, i32
  }
  func.func @transform_4(%arg0: i32) -> (i32, i32) {
    %c0_i32 = arith.constant 0 : i32
    %c0_i32_0 = arith.constant 0 : i32
    %c0_i32_1 = arith.constant 0 : i32
    return %c0_i32, %c0_i32_0 : i32, i32
  }
  func.func @transform_5(%arg0: i32) -> (i32, i32) {
    %c0_i32 = arith.constant 0 : i32
    %c0_i32_0 = arith.constant 0 : i32
    return %arg0, %c0_i32 : i32, i32
  }
}

module attributes {stable_mosaic.version = 11 : i64} {
  func.func @_ln_linear_kernel(%arg0: i32, %arg1: memref<16x32xf32, #tpu.memory_space<vmem>>, %arg2: memref<1x32xf32, #tpu.memory_space<vmem>>, %arg3: memref<1x32xf32, #tpu.memory_space<vmem>>, %arg4: memref<32x96xf32, #tpu.memory_space<vmem>>, %arg5: memref<1x96xf32, #tpu.memory_space<vmem>>, %arg6: memref<16x96xf32, #tpu.memory_space<vmem>>) attributes {dimension_semantics = [#tpu.dimension_semantics<parallel>], iteration_bounds = array<i64: 1>, scalar_prefetch = 0 : i64, scratch_operands = 0 : i64, tpu.core_type = #tpu.core_type<tc>, window_params = [{transform_indices = @transform_0, window_bounds = array<i64: 16, 32>}, {pipeline_mode = #tpu.pipeline_mode<synchronous>, transform_indices = @transform_1, window_bounds = array<i64: 1, 32>}, {pipeline_mode = #tpu.pipeline_mode<synchronous>, transform_indices = @transform_2, window_bounds = array<i64: 1, 32>}, {pipeline_mode = #tpu.pipeline_mode<synchronous>, transform_indices = @transform_3, window_bounds = array<i64: 32, 96>}, {pipeline_mode = #tpu.pipeline_mode<synchronous>, transform_indices = @transform_4, window_bounds = array<i64: 1, 96>}, {transform_indices = @transform_5, window_bounds = array<i64: 16, 96>}]} {
    %c0 = arith.constant 0 : index
    %c0_0 = arith.constant 0 : index
    %0 = vector.load %arg1[%c0, %c0_0] : memref<16x32xf32, #tpu.memory_space<vmem>>, vector<16x32xf32>
    %cst = arith.constant dense<0.000000e+00> : vector<16xf32>
    %1 = vector.multi_reduction <add>, %0, %cst [1] : vector<16x32xf32> to vector<16xf32>
    %2 = vector.shape_cast %1 : vector<16xf32> to vector<16x1xf32>
    %cst_1 = arith.constant 3.200000e+01 : f32
    %3 = vector.broadcast %cst_1 : f32 to vector<16x1xf32>
    %4 = arith.divf %2, %3 : vector<16x1xf32>
    %5 = vector.broadcast %4 : vector<16x1xf32> to vector<16x32xf32>
    %6 = arith.subf %0, %5 : vector<16x32xf32>
    %7 = arith.mulf %6, %6 : vector<16x32xf32>
    %cst_2 = arith.constant dense<0.000000e+00> : vector<16xf32>
    %8 = vector.multi_reduction <add>, %7, %cst_2 [1] : vector<16x32xf32> to vector<16xf32>
    %9 = vector.shape_cast %8 : vector<16xf32> to vector<16x1xf32>
    %cst_3 = arith.constant 3.200000e+01 : f32
    %10 = vector.broadcast %cst_3 : f32 to vector<16x1xf32>
    %11 = arith.divf %9, %10 : vector<16x1xf32>
    %12 = vector.broadcast %4 : vector<16x1xf32> to vector<16x32xf32>
    %13 = arith.subf %0, %12 : vector<16x32xf32>
    %cst_4 = arith.constant 9.99999997E-7 : f32
    %14 = vector.broadcast %cst_4 : f32 to vector<16x1xf32>
    %15 = arith.addf %11, %14 : vector<16x1xf32>
    %16 = math.rsqrt %15 : vector<16x1xf32>
    %17 = vector.broadcast %16 : vector<16x1xf32> to vector<16x32xf32>
    %18 = arith.mulf %13, %17 : vector<16x32xf32>
    %c0_5 = arith.constant 0 : index
    %c0_6 = arith.constant 0 : index
    %19 = vector.load %arg2[%c0_5, %c0_6] : memref<1x32xf32, #tpu.memory_space<vmem>>, vector<1x32xf32>
    %20 = vector.broadcast %19 : vector<1x32xf32> to vector<16x32xf32>
    %21 = arith.mulf %18, %20 : vector<16x32xf32>
    %c0_7 = arith.constant 0 : index
    %c0_8 = arith.constant 0 : index
    %22 = vector.load %arg3[%c0_7, %c0_8] : memref<1x32xf32, #tpu.memory_space<vmem>>, vector<1x32xf32>
    %23 = vector.broadcast %22 : vector<1x32xf32> to vector<16x32xf32>
    %24 = arith.addf %21, %23 : vector<16x32xf32>
    %c0_9 = arith.constant 0 : index
    %c0_10 = arith.constant 0 : index
    %25 = vector.load %arg4[%c0_9, %c0_10] : memref<32x96xf32, #tpu.memory_space<vmem>>, vector<32x96xf32>
    %cst_11 = arith.constant dense<0.000000e+00> : vector<16x96xf32>
    %26 = tpu.matmul %24, %25, %cst_11 {dimension_numbers = #tpu.dot_dimension_numbers<[1], [0], [0], [1], [0, 0, 1, 1], [], []>} : vector<16x32xf32>, vector<32x96xf32>, vector<16x96xf32> -> vector<16x96xf32>
    %c0_12 = arith.constant 0 : index
    %c0_13 = arith.constant 0 : index
    %27 = vector.load %arg5[%c0_12, %c0_13] : memref<1x96xf32, #tpu.memory_space<vmem>>, vector<1x96xf32>
    %28 = vector.broadcast %27 : vector<1x96xf32> to vector<16x96xf32>
    %29 = arith.addf %26, %28 : vector<16x96xf32>
    %c0_14 = arith.constant 0 : index
    %c0_15 = arith.constant 0 : index
    %30 = vector.load %arg6[%c0_14, %c0_15] : memref<16x96xf32, #tpu.memory_space<vmem>>, vector<16x96xf32>
    tpu.vector_store %arg6[%c0_14, %c0_15], %29 {strides = array<i32>} : memref<16x96xf32, #tpu.memory_space<vmem>>, vector<16x96xf32>,
    return
  }
  func.func @transform_0(%arg0: i32) -> (i32, i32) {
    %c0_i32 = arith.constant 0 : i32
    %c0_i32_0 = arith.constant 0 : i32
    return %arg0, %c0_i32 : i32, i32
  }
  func.func @transform_1(%arg0: i32) -> (i32, i32) {
    %c0_i32 = arith.constant 0 : i32
    %c0_i32_0 = arith.constant 0 : i32
    %c0_i32_1 = arith.constant 0 : i32
    return %c0_i32, %c0_i32_0 : i32, i32
  }
  func.func @transform_2(%arg0: i32) -> (i32, i32) {
    %c0_i32 = arith.constant 0 : i32
    %c0_i32_0 = arith.constant 0 : i32
    %c0_i32_1 = arith.constant 0 : i32
    return %c0_i32, %c0_i32_0 : i32, i32
  }
  func.func @transform_3(%arg0: i32) -> (i32, i32) {
    %c0_i32 = arith.constant 0 : i32
    %c0_i32_0 = arith.constant 0 : i32
    %c0_i32_1 = arith.constant 0 : i32
    return %c0_i32, %c0_i32_0 : i32, i32
  }
  func.func @transform_4(%arg0: i32) -> (i32, i32) {
    %c0_i32 = arith.constant 0 : i32
    %c0_i32_0 = arith.constant 0 : i32
    %c0_i32_1 = arith.constant 0 : i32
    return %c0_i32, %c0_i32_0 : i32, i32
  }
  func.func @transform_5(%arg0: i32) -> (i32, i32) {
    %c0_i32 = arith.constant 0 : i32
    %c0_i32_0 = arith.constant 0 : i32
    return %arg0, %c0_i32 : i32, i32
  }
}

module attributes {stable_mosaic.version = 11 : i64} {
  func.func @_self_attn_kernel(%arg0: i32, %arg1: memref<1x8x96xf32, #tpu.memory_space<vmem>>, %arg2: memref<1x8x8xf32, #tpu.memory_space<vmem>>, %arg3: memref<1x8x32xf32, #tpu.memory_space<vmem>>, %arg4: memref<32x32xf32, #tpu.memory_space<vmem>>, %arg5: memref<1x32xf32, #tpu.memory_space<vmem>>, %arg6: memref<1x8x32xf32, #tpu.memory_space<vmem>>) attributes {dimension_semantics = [#tpu.dimension_semantics<parallel>], iteration_bounds = array<i64: 2>, scalar_prefetch = 0 : i64, scratch_operands = 0 : i64, tpu.core_type = #tpu.core_type<tc>, window_params = [{transform_indices = @transform_0, window_bounds = array<i64: 1, 8, 96>}, {transform_indices = @transform_1, window_bounds = array<i64: 1, 8, 8>}, {transform_indices = @transform_2, window_bounds = array<i64: 1, 8, 32>}, {pipeline_mode = #tpu.pipeline_mode<synchronous>, transform_indices = @transform_3, window_bounds = array<i64: 32, 32>}, {pipeline_mode = #tpu.pipeline_mode<synchronous>, transform_indices = @transform_4, window_bounds = array<i64: 1, 32>}, {transform_indices = @transform_5, window_bounds = array<i64: 1, 8, 32>}]} {
    %c0 = arith.constant 0 : index
    %c0_0 = arith.constant 0 : index
    %c0_1 = arith.constant 0 : index
    %0 = vector.load %arg1[%c0, %c0_0, %c0_1] : memref<1x8x96xf32, #tpu.memory_space<vmem>>, vector<1x8x96xf32>
    %1 = vector.shape_cast %0 : vector<1x8x96xf32> to vector<8x96xf32>
    %2 = vector.extract_strided_slice %1 {offsets = [0, 0], sizes = [8, 32], strides = [1, 1]} : vector<8x96xf32> to vector<8x32xf32>
    %3 = vector.extract_strided_slice %1 {offsets = [0, 32], sizes = [8, 32], strides = [1, 1]} : vector<8x96xf32> to vector<8x32xf32>
    %4 = vector.extract_strided_slice %1 {offsets = [0, 64], sizes = [8, 32], strides = [1, 1]} : vector<8x96xf32> to vector<8x32xf32>
    %c0_2 = arith.constant 0 : index
    %c0_3 = arith.constant 0 : index
    %c0_4 = arith.constant 0 : index
    %5 = vector.load %arg2[%c0_2, %c0_3, %c0_4] : memref<1x8x8xf32, #tpu.memory_space<vmem>>, vector<1x8x8xf32>
    %6 = vector.shape_cast %5 : vector<1x8x8xf32> to vector<8x8xf32>
    %cst = arith.constant 1.000000e+00 : f32
    %7 = vector.broadcast %cst : f32 to vector<8x8xf32>
    %8 = arith.subf %7, %6 : vector<8x8xf32>
    %cst_5 = arith.constant -1.000000e+09 : f32
    %9 = vector.broadcast %cst_5 : f32 to vector<8x8xf32>
    %10 = arith.mulf %8, %9 : vector<8x8xf32>
    %11 = vector.extract_strided_slice %2 {offsets = [0, 0], sizes = [8, 8], strides = [1, 1]} : vector<8x32xf32> to vector<8x8xf32>
    %12 = vector.extract_strided_slice %3 {offsets = [0, 0], sizes = [8, 8], strides = [1, 1]} : vector<8x32xf32> to vector<8x8xf32>
    %13 = vector.extract_strided_slice %4 {offsets = [0, 0], sizes = [8, 8], strides = [1, 1]} : vector<8x32xf32> to vector<8x8xf32>
    %cst_6 = arith.constant dense<0.000000e+00> : vector<8x8xf32>
    %14 = tpu.matmul %11, %12, %cst_6 {dimension_numbers = #tpu.dot_dimension_numbers<[1], [1], [0], [0], [0, 0, 1, 0], [], []>} : vector<8x8xf32>, vector<8x8xf32>, vector<8x8xf32> -> vector<8x8xf32>
    %cst_7 = arith.constant 0.353553385 : f32
    %15 = vector.broadcast %cst_7 : f32 to vector<8x8xf32>
    %16 = arith.mulf %14, %15 : vector<8x8xf32>
    %17 = arith.addf %16, %10 : vector<8x8xf32>
    %cst_8 = arith.constant dense<0xFF800000> : vector<8xf32>
    %18 = vector.multi_reduction <maximumf>, %17, %cst_8 [1] : vector<8x8xf32> to vector<8xf32>
    %19 = vector.shape_cast %18 : vector<8xf32> to vector<8x1xf32>
    %20 = vector.broadcast %19 : vector<8x1xf32> to vector<8x8xf32>
    %21 = arith.subf %17, %20 : vector<8x8xf32>
    %22 = math.exp %21 : vector<8x8xf32>
    %cst_9 = arith.constant dense<0.000000e+00> : vector<8xf32>
    %23 = vector.multi_reduction <add>, %22, %cst_9 [1] : vector<8x8xf32> to vector<8xf32>
    %24 = vector.shape_cast %23 : vector<8xf32> to vector<8x1xf32>
    %25 = tpu.reciprocal %24 : vector<8x1xf32> -> vector<8x1xf32>
    %26 = vector.broadcast %25 : vector<8x1xf32> to vector<8x8xf32>
    %27 = arith.mulf %22, %26 : vector<8x8xf32>
    %cst_10 = arith.constant dense<0.000000e+00> : vector<8x8xf32>
    %28 = tpu.matmul %27, %13, %cst_10 {dimension_numbers = #tpu.dot_dimension_numbers<[1], [0], [0], [1], [0, 0, 1, 1], [], []>} : vector<8x8xf32>, vector<8x8xf32>, vector<8x8xf32> -> vector<8x8xf32>
    %29 = vector.extract_strided_slice %2 {offsets = [0, 8], sizes = [8, 8], strides = [1, 1]} : vector<8x32xf32> to vector<8x8xf32>
    %30 = vector.extract_strided_slice %3 {offsets = [0, 8], sizes = [8, 8], strides = [1, 1]} : vector<8x32xf32> to vector<8x8xf32>
    %31 = vector.extract_strided_slice %4 {offsets = [0, 8], sizes = [8, 8], strides = [1, 1]} : vector<8x32xf32> to vector<8x8xf32>
    %cst_11 = arith.constant dense<0.000000e+00> : vector<8x8xf32>
    %32 = tpu.matmul %29, %30, %cst_11 {dimension_numbers = #tpu.dot_dimension_numbers<[1], [1], [0], [0], [0, 0, 1, 0], [], []>} : vector<8x8xf32>, vector<8x8xf32>, vector<8x8xf32> -> vector<8x8xf32>
    %cst_12 = arith.constant 0.353553385 : f32
    %33 = vector.broadcast %cst_12 : f32 to vector<8x8xf32>
    %34 = arith.mulf %32, %33 : vector<8x8xf32>
    %35 = arith.addf %34, %10 : vector<8x8xf32>
    %cst_13 = arith.constant dense<0xFF800000> : vector<8xf32>
    %36 = vector.multi_reduction <maximumf>, %35, %cst_13 [1] : vector<8x8xf32> to vector<8xf32>
    %37 = vector.shape_cast %36 : vector<8xf32> to vector<8x1xf32>
    %38 = vector.broadcast %37 : vector<8x1xf32> to vector<8x8xf32>
    %39 = arith.subf %35, %38 : vector<8x8xf32>
    %40 = math.exp %39 : vector<8x8xf32>
    %cst_14 = arith.constant dense<0.000000e+00> : vector<8xf32>
    %41 = vector.multi_reduction <add>, %40, %cst_14 [1] : vector<8x8xf32> to vector<8xf32>
    %42 = vector.shape_cast %41 : vector<8xf32> to vector<8x1xf32>
    %43 = tpu.reciprocal %42 : vector<8x1xf32> -> vector<8x1xf32>
    %44 = vector.broadcast %43 : vector<8x1xf32> to vector<8x8xf32>
    %45 = arith.mulf %40, %44 : vector<8x8xf32>
    %cst_15 = arith.constant dense<0.000000e+00> : vector<8x8xf32>
    %46 = tpu.matmul %45, %31, %cst_15 {dimension_numbers = #tpu.dot_dimension_numbers<[1], [0], [0], [1], [0, 0, 1, 1], [], []>} : vector<8x8xf32>, vector<8x8xf32>, vector<8x8xf32> -> vector<8x8xf32>
    %47 = vector.extract_strided_slice %2 {offsets = [0, 16], sizes = [8, 8], strides = [1, 1]} : vector<8x32xf32> to vector<8x8xf32>
    %48 = vector.extract_strided_slice %3 {offsets = [0, 16], sizes = [8, 8], strides = [1, 1]} : vector<8x32xf32> to vector<8x8xf32>
    %49 = vector.extract_strided_slice %4 {offsets = [0, 16], sizes = [8, 8], strides = [1, 1]} : vector<8x32xf32> to vector<8x8xf32>
    %cst_16 = arith.constant dense<0.000000e+00> : vector<8x8xf32>
    %50 = tpu.matmul %47, %48, %cst_16 {dimension_numbers = #tpu.dot_dimension_numbers<[1], [1], [0], [0], [0, 0, 1, 0], [], []>} : vector<8x8xf32>, vector<8x8xf32>, vector<8x8xf32> -> vector<8x8xf32>
    %cst_17 = arith.constant 0.353553385 : f32
    %51 = vector.broadcast %cst_17 : f32 to vector<8x8xf32>
    %52 = arith.mulf %50, %51 : vector<8x8xf32>
    %53 = arith.addf %52, %10 : vector<8x8xf32>
    %cst_18 = arith.constant dense<0xFF800000> : vector<8xf32>
    %54 = vector.multi_reduction <maximumf>, %53, %cst_18 [1] : vector<8x8xf32> to vector<8xf32>
    %55 = vector.shape_cast %54 : vector<8xf32> to vector<8x1xf32>
    %56 = vector.broadcast %55 : vector<8x1xf32> to vector<8x8xf32>
    %57 = arith.subf %53, %56 : vector<8x8xf32>
    %58 = math.exp %57 : vector<8x8xf32>
    %cst_19 = arith.constant dense<0.000000e+00> : vector<8xf32>
    %59 = vector.multi_reduction <add>, %58, %cst_19 [1] : vector<8x8xf32> to vector<8xf32>
    %60 = vector.shape_cast %59 : vector<8xf32> to vector<8x1xf32>
    %61 = tpu.reciprocal %60 : vector<8x1xf32> -> vector<8x1xf32>
    %62 = vector.broadcast %61 : vector<8x1xf32> to vector<8x8xf32>
    %63 = arith.mulf %58, %62 : vector<8x8xf32>
    %cst_20 = arith.constant dense<0.000000e+00> : vector<8x8xf32>
    %64 = tpu.matmul %63, %49, %cst_20 {dimension_numbers = #tpu.dot_dimension_numbers<[1], [0], [0], [1], [0, 0, 1, 1], [], []>} : vector<8x8xf32>, vector<8x8xf32>, vector<8x8xf32> -> vector<8x8xf32>
    %65 = vector.extract_strided_slice %2 {offsets = [0, 24], sizes = [8, 8], strides = [1, 1]} : vector<8x32xf32> to vector<8x8xf32>
    %66 = vector.extract_strided_slice %3 {offsets = [0, 24], sizes = [8, 8], strides = [1, 1]} : vector<8x32xf32> to vector<8x8xf32>
    %67 = vector.extract_strided_slice %4 {offsets = [0, 24], sizes = [8, 8], strides = [1, 1]} : vector<8x32xf32> to vector<8x8xf32>
    %cst_21 = arith.constant dense<0.000000e+00> : vector<8x8xf32>
    %68 = tpu.matmul %65, %66, %cst_21 {dimension_numbers = #tpu.dot_dimension_numbers<[1], [1], [0], [0], [0, 0, 1, 0], [], []>} : vector<8x8xf32>, vector<8x8xf32>, vector<8x8xf32> -> vector<8x8xf32>
    %cst_22 = arith.constant 0.353553385 : f32
    %69 = vector.broadcast %cst_22 : f32 to vector<8x8xf32>
    %70 = arith.mulf %68, %69 : vector<8x8xf32>
    %71 = arith.addf %70, %10 : vector<8x8xf32>
    %cst_23 = arith.constant dense<0xFF800000> : vector<8xf32>
    %72 = vector.multi_reduction <maximumf>, %71, %cst_23 [1] : vector<8x8xf32> to vector<8xf32>
    %73 = vector.shape_cast %72 : vector<8xf32> to vector<8x1xf32>
    %74 = vector.broadcast %73 : vector<8x1xf32> to vector<8x8xf32>
    %75 = arith.subf %71, %74 : vector<8x8xf32>
    %76 = math.exp %75 : vector<8x8xf32>
    %cst_24 = arith.constant dense<0.000000e+00> : vector<8xf32>
    %77 = vector.multi_reduction <add>, %76, %cst_24 [1] : vector<8x8xf32> to vector<8xf32>
    %78 = vector.shape_cast %77 : vector<8xf32> to vector<8x1xf32>
    %79 = tpu.reciprocal %78 : vector<8x1xf32> -> vector<8x1xf32>
    %80 = vector.broadcast %79 : vector<8x1xf32> to vector<8x8xf32>
    %81 = arith.mulf %76, %80 : vector<8x8xf32>
    %cst_25 = arith.constant dense<0.000000e+00> : vector<8x8xf32>
    %82 = tpu.matmul %81, %67, %cst_25 {dimension_numbers = #tpu.dot_dimension_numbers<[1], [0], [0], [1], [0, 0, 1, 1], [], []>} : vector<8x8xf32>, vector<8x8xf32>, vector<8x8xf32> -> vector<8x8xf32>
    %83 = tpu.concatenate %28, %46, %64, %82 in 1 : vector<8x8xf32>, vector<8x8xf32>, vector<8x8xf32>, vector<8x8xf32> -> vector<8x32xf32>
    %c0_26 = arith.constant 0 : index
    %c0_27 = arith.constant 0 : index
    %84 = vector.load %arg4[%c0_26, %c0_27] : memref<32x32xf32, #tpu.memory_space<vmem>>, vector<32x32xf32>
    %cst_28 = arith.constant dense<0.000000e+00> : vector<8x32xf32>
    %85 = tpu.matmul %83, %84, %cst_28 {dimension_numbers = #tpu.dot_dimension_numbers<[1], [0], [0], [1], [0, 0, 1, 1], [], []>} : vector<8x32xf32>, vector<32x32xf32>, vector<8x32xf32> -> vector<8x32xf32>
    %c0_29 = arith.constant 0 : index
    %c0_30 = arith.constant 0 : index
    %86 = vector.load %arg5[%c0_29, %c0_30] : memref<1x32xf32, #tpu.memory_space<vmem>>, vector<1x32xf32>
    %87 = vector.broadcast %86 : vector<1x32xf32> to vector<8x32xf32>
    %88 = arith.addf %85, %87 : vector<8x32xf32>
    %c0_31 = arith.constant 0 : index
    %c0_32 = arith.constant 0 : index
    %c0_33 = arith.constant 0 : index
    %89 = vector.load %arg3[%c0_31, %c0_32, %c0_33] : memref<1x8x32xf32, #tpu.memory_space<vmem>>, vector<1x8x32xf32>
    %90 = vector.shape_cast %89 : vector<1x8x32xf32> to vector<8x32xf32>
    %91 = arith.addf %90, %88 : vector<8x32xf32>
    %c0_34 = arith.constant 0 : index
    %c0_35 = arith.constant 0 : index
    %c0_36 = arith.constant 0 : index
    %92 = vector.load %arg6[%c0_34, %c0_35, %c0_36] : memref<1x8x32xf32, #tpu.memory_space<vmem>>, vector<1x8x32xf32>
    %93 = vector.shape_cast %92 : vector<1x8x32xf32> to vector<8x32xf32>
    %94 = vector.shape_cast %91 : vector<8x32xf32> to vector<1x8x32xf32>
    tpu.vector_store %arg6[%c0_34, %c0_35, %c0_36], %94 {strides = array<i32>} : memref<1x8x32xf32, #tpu.memory_space<vmem>>, vector<1x8x32xf32>,
    return
  }
  func.func @transform_0(%arg0: i32) -> (i32, i32, i32) {
    %c0_i32 = arith.constant 0 : i32
    %c0_i32_0 = arith.constant 0 : i32
    %c0_i32_1 = arith.constant 0 : i32
    return %arg0, %c0_i32, %c0_i32_0 : i32, i32, i32
  }
  func.func @transform_1(%arg0: i32) -> (i32, i32, i32) {
    %c0_i32 = arith.constant 0 : i32
    %c0_i32_0 = arith.constant 0 : i32
    %c0_i32_1 = arith.constant 0 : i32
    return %arg0, %c0_i32, %c0_i32_0 : i32, i32, i32
  }
  func.func @transform_2(%arg0: i32) -> (i32, i32, i32) {
    %c0_i32 = arith.constant 0 : i32
    %c0_i32_0 = arith.constant 0 : i32
    %c0_i32_1 = arith.constant 0 : i32
    return %arg0, %c0_i32, %c0_i32_0 : i32, i32, i32
  }
  func.func @transform_3(%arg0: i32) -> (i32, i32) {
    %c0_i32 = arith.constant 0 : i32
    %c0_i32_0 = arith.constant 0 : i32
    %c0_i32_1 = arith.constant 0 : i32
    return %c0_i32, %c0_i32_0 : i32, i32
  }
  func.func @transform_4(%arg0: i32) -> (i32, i32) {
    %c0_i32 = arith.constant 0 : i32
    %c0_i32_0 = arith.constant 0 : i32
    %c0_i32_1 = arith.constant 0 : i32
    return %c0_i32, %c0_i32_0 : i32, i32
  }
  func.func @transform_5(%arg0: i32) -> (i32, i32, i32) {
    %c0_i32 = arith.constant 0 : i32
    %c0_i32_0 = arith.constant 0 : i32
    %c0_i32_1 = arith.constant 0 : i32
    return %arg0, %c0_i32, %c0_i32_0 : i32, i32, i32
  }
}

module attributes {stable_mosaic.version = 11 : i64} {
  func.func @_ln_linear_kernel(%arg0: i32, %arg1: memref<16x32xf32, #tpu.memory_space<vmem>>, %arg2: memref<1x32xf32, #tpu.memory_space<vmem>>, %arg3: memref<1x32xf32, #tpu.memory_space<vmem>>, %arg4: memref<32x32xf32, #tpu.memory_space<vmem>>, %arg5: memref<1x32xf32, #tpu.memory_space<vmem>>, %arg6: memref<16x32xf32, #tpu.memory_space<vmem>>) attributes {dimension_semantics = [#tpu.dimension_semantics<parallel>], iteration_bounds = array<i64: 1>, scalar_prefetch = 0 : i64, scratch_operands = 0 : i64, tpu.core_type = #tpu.core_type<tc>, window_params = [{transform_indices = @transform_0, window_bounds = array<i64: 16, 32>}, {pipeline_mode = #tpu.pipeline_mode<synchronous>, transform_indices = @transform_1, window_bounds = array<i64: 1, 32>}, {pipeline_mode = #tpu.pipeline_mode<synchronous>, transform_indices = @transform_2, window_bounds = array<i64: 1, 32>}, {pipeline_mode = #tpu.pipeline_mode<synchronous>, transform_indices = @transform_3, window_bounds = array<i64: 32, 32>}, {pipeline_mode = #tpu.pipeline_mode<synchronous>, transform_indices = @transform_4, window_bounds = array<i64: 1, 32>}, {transform_indices = @transform_5, window_bounds = array<i64: 16, 32>}]} {
    %c0 = arith.constant 0 : index
    %c0_0 = arith.constant 0 : index
    %0 = vector.load %arg1[%c0, %c0_0] : memref<16x32xf32, #tpu.memory_space<vmem>>, vector<16x32xf32>
    %cst = arith.constant dense<0.000000e+00> : vector<16xf32>
    %1 = vector.multi_reduction <add>, %0, %cst [1] : vector<16x32xf32> to vector<16xf32>
    %2 = vector.shape_cast %1 : vector<16xf32> to vector<16x1xf32>
    %cst_1 = arith.constant 3.200000e+01 : f32
    %3 = vector.broadcast %cst_1 : f32 to vector<16x1xf32>
    %4 = arith.divf %2, %3 : vector<16x1xf32>
    %5 = vector.broadcast %4 : vector<16x1xf32> to vector<16x32xf32>
    %6 = arith.subf %0, %5 : vector<16x32xf32>
    %7 = arith.mulf %6, %6 : vector<16x32xf32>
    %cst_2 = arith.constant dense<0.000000e+00> : vector<16xf32>
    %8 = vector.multi_reduction <add>, %7, %cst_2 [1] : vector<16x32xf32> to vector<16xf32>
    %9 = vector.shape_cast %8 : vector<16xf32> to vector<16x1xf32>
    %cst_3 = arith.constant 3.200000e+01 : f32
    %10 = vector.broadcast %cst_3 : f32 to vector<16x1xf32>
    %11 = arith.divf %9, %10 : vector<16x1xf32>
    %12 = vector.broadcast %4 : vector<16x1xf32> to vector<16x32xf32>
    %13 = arith.subf %0, %12 : vector<16x32xf32>
    %cst_4 = arith.constant 9.99999997E-7 : f32
    %14 = vector.broadcast %cst_4 : f32 to vector<16x1xf32>
    %15 = arith.addf %11, %14 : vector<16x1xf32>
    %16 = math.rsqrt %15 : vector<16x1xf32>
    %17 = vector.broadcast %16 : vector<16x1xf32> to vector<16x32xf32>
    %18 = arith.mulf %13, %17 : vector<16x32xf32>
    %c0_5 = arith.constant 0 : index
    %c0_6 = arith.constant 0 : index
    %19 = vector.load %arg2[%c0_5, %c0_6] : memref<1x32xf32, #tpu.memory_space<vmem>>, vector<1x32xf32>
    %20 = vector.broadcast %19 : vector<1x32xf32> to vector<16x32xf32>
    %21 = arith.mulf %18, %20 : vector<16x32xf32>
    %c0_7 = arith.constant 0 : index
    %c0_8 = arith.constant 0 : index
    %22 = vector.load %arg3[%c0_7, %c0_8] : memref<1x32xf32, #tpu.memory_space<vmem>>, vector<1x32xf32>
    %23 = vector.broadcast %22 : vector<1x32xf32> to vector<16x32xf32>
    %24 = arith.addf %21, %23 : vector<16x32xf32>
    %c0_9 = arith.constant 0 : index
    %c0_10 = arith.constant 0 : index
    %25 = vector.load %arg4[%c0_9, %c0_10] : memref<32x32xf32, #tpu.memory_space<vmem>>, vector<32x32xf32>
    %cst_11 = arith.constant dense<0.000000e+00> : vector<16x32xf32>
    %26 = tpu.matmul %24, %25, %cst_11 {dimension_numbers = #tpu.dot_dimension_numbers<[1], [0], [0], [1], [0, 0, 1, 1], [], []>} : vector<16x32xf32>, vector<32x32xf32>, vector<16x32xf32> -> vector<16x32xf32>
    %c0_12 = arith.constant 0 : index
    %c0_13 = arith.constant 0 : index
    %27 = vector.load %arg5[%c0_12, %c0_13] : memref<1x32xf32, #tpu.memory_space<vmem>>, vector<1x32xf32>
    %28 = vector.broadcast %27 : vector<1x32xf32> to vector<16x32xf32>
    %29 = arith.addf %26, %28 : vector<16x32xf32>
    %c0_14 = arith.constant 0 : index
    %c0_15 = arith.constant 0 : index
    %30 = vector.load %arg6[%c0_14, %c0_15] : memref<16x32xf32, #tpu.memory_space<vmem>>, vector<16x32xf32>
    tpu.vector_store %arg6[%c0_14, %c0_15], %29 {strides = array<i32>} : memref<16x32xf32, #tpu.memory_space<vmem>>, vector<16x32xf32>,
    return
  }
  func.func @transform_0(%arg0: i32) -> (i32, i32) {
    %c0_i32 = arith.constant 0 : i32
    %c0_i32_0 = arith.constant 0 : i32
    return %arg0, %c0_i32 : i32, i32
  }
  func.func @transform_1(%arg0: i32) -> (i32, i32) {
    %c0_i32 = arith.constant 0 : i32
    %c0_i32_0 = arith.constant 0 : i32
    %c0_i32_1 = arith.constant 0 : i32
    return %c0_i32, %c0_i32_0 : i32, i32
  }
  func.func @transform_2(%arg0: i32) -> (i32, i32) {
    %c0_i32 = arith.constant 0 : i32
    %c0_i32_0 = arith.constant 0 : i32
    %c0_i32_1 = arith.constant 0 : i32
    return %c0_i32, %c0_i32_0 : i32, i32
  }
  func.func @transform_3(%arg0: i32) -> (i32, i32) {
    %c0_i32 = arith.constant 0 : i32
    %c0_i32_0 = arith.constant 0 : i32
    %c0_i32_1 = arith.constant 0 : i32
    return %c0_i32, %c0_i32_0 : i32, i32
  }
  func.func @transform_4(%arg0: i32) -> (i32, i32) {
    %c0_i32 = arith.constant 0 : i32
    %c0_i32_0 = arith.constant 0 : i32
    %c0_i32_1 = arith.constant 0 : i32
    return %c0_i32, %c0_i32_0 : i32, i32
  }
  func.func @transform_5(%arg0: i32) -> (i32, i32) {
    %c0_i32 = arith.constant 0 : i32
    %c0_i32_0 = arith.constant 0 : i32
    return %arg0, %c0_i32 : i32, i32
  }
}

module attributes {stable_mosaic.version = 11 : i64} {
  func.func @_ln_ffn_kernel(%arg0: i32, %arg1: memref<16x32xf32, #tpu.memory_space<vmem>>, %arg2: memref<1x32xf32, #tpu.memory_space<vmem>>, %arg3: memref<1x32xf32, #tpu.memory_space<vmem>>, %arg4: memref<32x64xf32, #tpu.memory_space<vmem>>, %arg5: memref<1x64xf32, #tpu.memory_space<vmem>>, %arg6: memref<64x32xf32, #tpu.memory_space<vmem>>, %arg7: memref<1x32xf32, #tpu.memory_space<vmem>>, %arg8: memref<16x32xf32, #tpu.memory_space<vmem>>) attributes {dimension_semantics = [#tpu.dimension_semantics<parallel>], iteration_bounds = array<i64: 1>, scalar_prefetch = 0 : i64, scratch_operands = 0 : i64, tpu.core_type = #tpu.core_type<tc>, window_params = [{transform_indices = @transform_0, window_bounds = array<i64: 16, 32>}, {pipeline_mode = #tpu.pipeline_mode<synchronous>, transform_indices = @transform_1, window_bounds = array<i64: 1, 32>}, {pipeline_mode = #tpu.pipeline_mode<synchronous>, transform_indices = @transform_2, window_bounds = array<i64: 1, 32>}, {pipeline_mode = #tpu.pipeline_mode<synchronous>, transform_indices = @transform_3, window_bounds = array<i64: 32, 64>}, {pipeline_mode = #tpu.pipeline_mode<synchronous>, transform_indices = @transform_4, window_bounds = array<i64: 1, 64>}, {pipeline_mode = #tpu.pipeline_mode<synchronous>, transform_indices = @transform_5, window_bounds = array<i64: 64, 32>}, {pipeline_mode = #tpu.pipeline_mode<synchronous>, transform_indices = @transform_6, window_bounds = array<i64: 1, 32>}, {transform_indices = @transform_7, window_bounds = array<i64: 16, 32>}]} {
    %c0 = arith.constant 0 : index
    %c0_0 = arith.constant 0 : index
    %0 = vector.load %arg1[%c0, %c0_0] : memref<16x32xf32, #tpu.memory_space<vmem>>, vector<16x32xf32>
    %cst = arith.constant dense<0.000000e+00> : vector<16xf32>
    %1 = vector.multi_reduction <add>, %0, %cst [1] : vector<16x32xf32> to vector<16xf32>
    %2 = vector.shape_cast %1 : vector<16xf32> to vector<16x1xf32>
    %cst_1 = arith.constant 3.200000e+01 : f32
    %3 = vector.broadcast %cst_1 : f32 to vector<16x1xf32>
    %4 = arith.divf %2, %3 : vector<16x1xf32>
    %5 = vector.broadcast %4 : vector<16x1xf32> to vector<16x32xf32>
    %6 = arith.subf %0, %5 : vector<16x32xf32>
    %7 = arith.mulf %6, %6 : vector<16x32xf32>
    %cst_2 = arith.constant dense<0.000000e+00> : vector<16xf32>
    %8 = vector.multi_reduction <add>, %7, %cst_2 [1] : vector<16x32xf32> to vector<16xf32>
    %9 = vector.shape_cast %8 : vector<16xf32> to vector<16x1xf32>
    %cst_3 = arith.constant 3.200000e+01 : f32
    %10 = vector.broadcast %cst_3 : f32 to vector<16x1xf32>
    %11 = arith.divf %9, %10 : vector<16x1xf32>
    %12 = vector.broadcast %4 : vector<16x1xf32> to vector<16x32xf32>
    %13 = arith.subf %0, %12 : vector<16x32xf32>
    %cst_4 = arith.constant 9.99999997E-7 : f32
    %14 = vector.broadcast %cst_4 : f32 to vector<16x1xf32>
    %15 = arith.addf %11, %14 : vector<16x1xf32>
    %16 = math.rsqrt %15 : vector<16x1xf32>
    %17 = vector.broadcast %16 : vector<16x1xf32> to vector<16x32xf32>
    %18 = arith.mulf %13, %17 : vector<16x32xf32>
    %c0_5 = arith.constant 0 : index
    %c0_6 = arith.constant 0 : index
    %19 = vector.load %arg2[%c0_5, %c0_6] : memref<1x32xf32, #tpu.memory_space<vmem>>, vector<1x32xf32>
    %20 = vector.broadcast %19 : vector<1x32xf32> to vector<16x32xf32>
    %21 = arith.mulf %18, %20 : vector<16x32xf32>
    %c0_7 = arith.constant 0 : index
    %c0_8 = arith.constant 0 : index
    %22 = vector.load %arg3[%c0_7, %c0_8] : memref<1x32xf32, #tpu.memory_space<vmem>>, vector<1x32xf32>
    %23 = vector.broadcast %22 : vector<1x32xf32> to vector<16x32xf32>
    %24 = arith.addf %21, %23 : vector<16x32xf32>
    %c0_9 = arith.constant 0 : index
    %c0_10 = arith.constant 0 : index
    %25 = vector.load %arg4[%c0_9, %c0_10] : memref<32x64xf32, #tpu.memory_space<vmem>>, vector<32x64xf32>
    %cst_11 = arith.constant dense<0.000000e+00> : vector<16x64xf32>
    %26 = tpu.matmul %24, %25, %cst_11 {dimension_numbers = #tpu.dot_dimension_numbers<[1], [0], [0], [1], [0, 0, 1, 1], [], []>} : vector<16x32xf32>, vector<32x64xf32>, vector<16x64xf32> -> vector<16x64xf32>
    %c0_12 = arith.constant 0 : index
    %c0_13 = arith.constant 0 : index
    %27 = vector.load %arg5[%c0_12, %c0_13] : memref<1x64xf32, #tpu.memory_space<vmem>>, vector<1x64xf32>
    %28 = vector.broadcast %27 : vector<1x64xf32> to vector<16x64xf32>
    %29 = arith.addf %26, %28 : vector<16x64xf32>
    %cst_14 = arith.constant 0.000000e+00 : f32
    %30 = vector.broadcast %cst_14 : f32 to vector<16x64xf32>
    %31 = arith.maximumf %29, %30 : vector<16x64xf32>
    %c0_15 = arith.constant 0 : index
    %c0_16 = arith.constant 0 : index
    %32 = vector.load %arg6[%c0_15, %c0_16] : memref<64x32xf32, #tpu.memory_space<vmem>>, vector<64x32xf32>
    %cst_17 = arith.constant dense<0.000000e+00> : vector<16x32xf32>
    %33 = tpu.matmul %31, %32, %cst_17 {dimension_numbers = #tpu.dot_dimension_numbers<[1], [0], [0], [1], [0, 0, 1, 1], [], []>} : vector<16x64xf32>, vector<64x32xf32>, vector<16x32xf32> -> vector<16x32xf32>
    %c0_18 = arith.constant 0 : index
    %c0_19 = arith.constant 0 : index
    %34 = vector.load %arg7[%c0_18, %c0_19] : memref<1x32xf32, #tpu.memory_space<vmem>>, vector<1x32xf32>
    %35 = vector.broadcast %34 : vector<1x32xf32> to vector<16x32xf32>
    %36 = arith.addf %33, %35 : vector<16x32xf32>
    %37 = arith.addf %0, %36 : vector<16x32xf32>
    %c0_20 = arith.constant 0 : index
    %c0_21 = arith.constant 0 : index
    %38 = vector.load %arg8[%c0_20, %c0_21] : memref<16x32xf32, #tpu.memory_space<vmem>>, vector<16x32xf32>
    tpu.vector_store %arg8[%c0_20, %c0_21], %37 {strides = array<i32>} : memref<16x32xf32, #tpu.memory_space<vmem>>, vector<16x32xf32>,
    return
  }
  func.func @transform_0(%arg0: i32) -> (i32, i32) {
    %c0_i32 = arith.constant 0 : i32
    %c0_i32_0 = arith.constant 0 : i32
    return %arg0, %c0_i32 : i32, i32
  }
  func.func @transform_1(%arg0: i32) -> (i32, i32) {
    %c0_i32 = arith.constant 0 : i32
    %c0_i32_0 = arith.constant 0 : i32
    %c0_i32_1 = arith.constant 0 : i32
    return %c0_i32, %c0_i32_0 : i32, i32
  }
  func.func @transform_2(%arg0: i32) -> (i32, i32) {
    %c0_i32 = arith.constant 0 : i32
    %c0_i32_0 = arith.constant 0 : i32
    %c0_i32_1 = arith.constant 0 : i32
    return %c0_i32, %c0_i32_0 : i32, i32
  }
  func.func @transform_3(%arg0: i32) -> (i32, i32) {
    %c0_i32 = arith.constant 0 : i32
    %c0_i32_0 = arith.constant 0 : i32
    %c0_i32_1 = arith.constant 0 : i32
    return %c0_i32, %c0_i32_0 : i32, i32
  }
  func.func @transform_4(%arg0: i32) -> (i32, i32) {
    %c0_i32 = arith.constant 0 : i32
    %c0_i32_0 = arith.constant 0 : i32
    %c0_i32_1 = arith.constant 0 : i32
    return %c0_i32, %c0_i32_0 : i32, i32
  }
  func.func @transform_5(%arg0: i32) -> (i32, i32) {
    %c0_i32 = arith.constant 0 : i32
    %c0_i32_0 = arith.constant 0 : i32
    %c0_i32_1 = arith.constant 0 : i32
    return %c0_i32, %c0_i32_0 : i32, i32
  }
  func.func @transform_6(%arg0: i32) -> (i32, i32) {
    %c0_i32 = arith.constant 0 : i32
    %c0_i32_0 = arith.constant 0 : i32
    %c0_i32_1 = arith.constant 0 : i32
    return %c0_i32, %c0_i32_0 : i32, i32
  }
  func.func @transform_7(%arg0: i32) -> (i32, i32) {
    %c0_i32 = arith.constant 0 : i32
    %c0_i32_0 = arith.constant 0 : i32
    return %arg0, %c0_i32 : i32, i32
  }
}

module attributes {stable_mosaic.version = 11 : i64} {
  func.func @_ln_kernel(%arg0: i32, %arg1: memref<16x32xf32, #tpu.memory_space<vmem>>, %arg2: memref<1x32xf32, #tpu.memory_space<vmem>>, %arg3: memref<1x32xf32, #tpu.memory_space<vmem>>, %arg4: memref<16x32xf32, #tpu.memory_space<vmem>>) attributes {dimension_semantics = [#tpu.dimension_semantics<parallel>], iteration_bounds = array<i64: 1>, scalar_prefetch = 0 : i64, scratch_operands = 0 : i64, tpu.core_type = #tpu.core_type<tc>, window_params = [{transform_indices = @transform_0, window_bounds = array<i64: 16, 32>}, {pipeline_mode = #tpu.pipeline_mode<synchronous>, transform_indices = @transform_1, window_bounds = array<i64: 1, 32>}, {pipeline_mode = #tpu.pipeline_mode<synchronous>, transform_indices = @transform_2, window_bounds = array<i64: 1, 32>}, {transform_indices = @transform_3, window_bounds = array<i64: 16, 32>}]} {
    %c0 = arith.constant 0 : index
    %c0_0 = arith.constant 0 : index
    %0 = vector.load %arg1[%c0, %c0_0] : memref<16x32xf32, #tpu.memory_space<vmem>>, vector<16x32xf32>
    %cst = arith.constant dense<0.000000e+00> : vector<16xf32>
    %1 = vector.multi_reduction <add>, %0, %cst [1] : vector<16x32xf32> to vector<16xf32>
    %2 = vector.shape_cast %1 : vector<16xf32> to vector<16x1xf32>
    %cst_1 = arith.constant 3.200000e+01 : f32
    %3 = vector.broadcast %cst_1 : f32 to vector<16x1xf32>
    %4 = arith.divf %2, %3 : vector<16x1xf32>
    %5 = vector.broadcast %4 : vector<16x1xf32> to vector<16x32xf32>
    %6 = arith.subf %0, %5 : vector<16x32xf32>
    %7 = arith.mulf %6, %6 : vector<16x32xf32>
    %cst_2 = arith.constant dense<0.000000e+00> : vector<16xf32>
    %8 = vector.multi_reduction <add>, %7, %cst_2 [1] : vector<16x32xf32> to vector<16xf32>
    %9 = vector.shape_cast %8 : vector<16xf32> to vector<16x1xf32>
    %cst_3 = arith.constant 3.200000e+01 : f32
    %10 = vector.broadcast %cst_3 : f32 to vector<16x1xf32>
    %11 = arith.divf %9, %10 : vector<16x1xf32>
    %12 = vector.broadcast %4 : vector<16x1xf32> to vector<16x32xf32>
    %13 = arith.subf %0, %12 : vector<16x32xf32>
    %cst_4 = arith.constant 9.99999997E-7 : f32
    %14 = vector.broadcast %cst_4 : f32 to vector<16x1xf32>
    %15 = arith.addf %11, %14 : vector<16x1xf32>
    %16 = math.rsqrt %15 : vector<16x1xf32>
    %17 = vector.broadcast %16 : vector<16x1xf32> to vector<16x32xf32>
    %18 = arith.mulf %13, %17 : vector<16x32xf32>
    %c0_5 = arith.constant 0 : index
    %c0_6 = arith.constant 0 : index
    %19 = vector.load %arg2[%c0_5, %c0_6] : memref<1x32xf32, #tpu.memory_space<vmem>>, vector<1x32xf32>
    %20 = vector.broadcast %19 : vector<1x32xf32> to vector<16x32xf32>
    %21 = arith.mulf %18, %20 : vector<16x32xf32>
    %c0_7 = arith.constant 0 : index
    %c0_8 = arith.constant 0 : index
    %22 = vector.load %arg3[%c0_7, %c0_8] : memref<1x32xf32, #tpu.memory_space<vmem>>, vector<1x32xf32>
    %23 = vector.broadcast %22 : vector<1x32xf32> to vector<16x32xf32>
    %24 = arith.addf %21, %23 : vector<16x32xf32>
    %c0_9 = arith.constant 0 : index
    %c0_10 = arith.constant 0 : index
    %25 = vector.load %arg4[%c0_9, %c0_10] : memref<16x32xf32, #tpu.memory_space<vmem>>, vector<16x32xf32>
    tpu.vector_store %arg4[%c0_9, %c0_10], %24 {strides = array<i32>} : memref<16x32xf32, #tpu.memory_space<vmem>>, vector<16x32xf32>,
    return
  }
  func.func @transform_0(%arg0: i32) -> (i32, i32) {
    %c0_i32 = arith.constant 0 : i32
    %c0_i32_0 = arith.constant 0 : i32
    return %arg0, %c0_i32 : i32, i32
  }
  func.func @transform_1(%arg0: i32) -> (i32, i32) {
    %c0_i32 = arith.constant 0 : i32
    %c0_i32_0 = arith.constant 0 : i32
    %c0_i32_1 = arith.constant 0 : i32
    return %c0_i32, %c0_i32_0 : i32, i32
  }
  func.func @transform_2(%arg0: i32) -> (i32, i32) {
    %c0_i32 = arith.constant 0 : i32
    %c0_i32_0 = arith.constant 0 : i32
    %c0_i32_1 = arith.constant 0 : i32
    return %c0_i32, %c0_i32_0 : i32, i32
  }
  func.func @transform_3(%arg0: i32) -> (i32, i32) {
    %c0_i32 = arith.constant 0 : i32
    %c0_i32_0 = arith.constant 0 : i32
    return %arg0, %c0_i32 : i32, i32
  }
}

module attributes {stable_mosaic.version = 11 : i64} {
  func.func @_cross_attn_kernel(%arg0: i32, %arg1: memref<1x8x32xf32, #tpu.memory_space<vmem>>, %arg2: memref<1x10x64xf32, #tpu.memory_space<vmem>>, %arg3: memref<1x1x10xf32, #tpu.memory_space<vmem>>, %arg4: memref<1x8x32xf32, #tpu.memory_space<vmem>>, %arg5: memref<32x32xf32, #tpu.memory_space<vmem>>, %arg6: memref<1x32xf32, #tpu.memory_space<vmem>>, %arg7: memref<1x8x32xf32, #tpu.memory_space<vmem>>) attributes {dimension_semantics = [#tpu.dimension_semantics<parallel>], iteration_bounds = array<i64: 2>, scalar_prefetch = 0 : i64, scratch_operands = 0 : i64, tpu.core_type = #tpu.core_type<tc>, window_params = [{transform_indices = @transform_0, window_bounds = array<i64: 1, 8, 32>}, {transform_indices = @transform_1, window_bounds = array<i64: 1, 10, 64>}, {transform_indices = @transform_2, window_bounds = array<i64: 1, 1, 10>}, {transform_indices = @transform_3, window_bounds = array<i64: 1, 8, 32>}, {pipeline_mode = #tpu.pipeline_mode<synchronous>, transform_indices = @transform_4, window_bounds = array<i64: 32, 32>}, {pipeline_mode = #tpu.pipeline_mode<synchronous>, transform_indices = @transform_5, window_bounds = array<i64: 1, 32>}, {transform_indices = @transform_6, window_bounds = array<i64: 1, 8, 32>}]} {
    %c0 = arith.constant 0 : index
    %c0_0 = arith.constant 0 : index
    %c0_1 = arith.constant 0 : index
    %0 = vector.load %arg1[%c0, %c0_0, %c0_1] : memref<1x8x32xf32, #tpu.memory_space<vmem>>, vector<1x8x32xf32>
    %1 = vector.shape_cast %0 : vector<1x8x32xf32> to vector<8x32xf32>
    %c0_2 = arith.constant 0 : index
    %c0_3 = arith.constant 0 : index
    %c0_4 = arith.constant 0 : index
    %2 = vector.load %arg2[%c0_2, %c0_3, %c0_4] : memref<1x10x64xf32, #tpu.memory_space<vmem>>, vector<1x10x64xf32>
    %3 = vector.shape_cast %2 : vector<1x10x64xf32> to vector<10x64xf32>
    %4 = vector.extract_strided_slice %3 {offsets = [0, 0], sizes = [10, 32], strides = [1, 1]} : vector<10x64xf32> to vector<10x32xf32>
    %5 = vector.extract_strided_slice %3 {offsets = [0, 32], sizes = [10, 32], strides = [1, 1]} : vector<10x64xf32> to vector<10x32xf32>
    %c0_5 = arith.constant 0 : index
    %c0_6 = arith.constant 0 : index
    %c0_7 = arith.constant 0 : index
    %6 = vector.load %arg3[%c0_5, %c0_6, %c0_7] : memref<1x1x10xf32, #tpu.memory_space<vmem>>, vector<1x1x10xf32>
    %7 = vector.shape_cast %6 : vector<1x1x10xf32> to vector<1x10xf32>
    %cst = arith.constant 1.000000e+00 : f32
    %8 = vector.broadcast %cst : f32 to vector<1x10xf32>
    %9 = arith.subf %8, %7 : vector<1x10xf32>
    %cst_8 = arith.constant -1.000000e+09 : f32
    %10 = vector.broadcast %cst_8 : f32 to vector<1x10xf32>
    %11 = arith.mulf %9, %10 : vector<1x10xf32>
    %12 = vector.extract_strided_slice %1 {offsets = [0, 0], sizes = [8, 8], strides = [1, 1]} : vector<8x32xf32> to vector<8x8xf32>
    %13 = vector.extract_strided_slice %4 {offsets = [0, 0], sizes = [10, 8], strides = [1, 1]} : vector<10x32xf32> to vector<10x8xf32>
    %14 = vector.extract_strided_slice %5 {offsets = [0, 0], sizes = [10, 8], strides = [1, 1]} : vector<10x32xf32> to vector<10x8xf32>
    %cst_9 = arith.constant dense<0.000000e+00> : vector<8x10xf32>
    %15 = tpu.matmul %12, %13, %cst_9 {dimension_numbers = #tpu.dot_dimension_numbers<[1], [1], [0], [0], [0, 0, 1, 0], [], []>} : vector<8x8xf32>, vector<10x8xf32>, vector<8x10xf32> -> vector<8x10xf32>
    %cst_10 = arith.constant 0.353553385 : f32
    %16 = vector.broadcast %cst_10 : f32 to vector<8x10xf32>
    %17 = arith.mulf %15, %16 : vector<8x10xf32>
    %18 = vector.broadcast %11 : vector<1x10xf32> to vector<8x10xf32>
    %19 = arith.addf %17, %18 : vector<8x10xf32>
    %cst_11 = arith.constant dense<0xFF800000> : vector<8xf32>
    %20 = vector.multi_reduction <maximumf>, %19, %cst_11 [1] : vector<8x10xf32> to vector<8xf32>
    %21 = vector.shape_cast %20 : vector<8xf32> to vector<8x1xf32>
    %22 = vector.broadcast %21 : vector<8x1xf32> to vector<8x10xf32>
    %23 = arith.subf %19, %22 : vector<8x10xf32>
    %24 = math.exp %23 : vector<8x10xf32>
    %cst_12 = arith.constant dense<0.000000e+00> : vector<8xf32>
    %25 = vector.multi_reduction <add>, %24, %cst_12 [1] : vector<8x10xf32> to vector<8xf32>
    %26 = vector.shape_cast %25 : vector<8xf32> to vector<8x1xf32>
    %27 = tpu.reciprocal %26 : vector<8x1xf32> -> vector<8x1xf32>
    %28 = vector.broadcast %27 : vector<8x1xf32> to vector<8x10xf32>
    %29 = arith.mulf %24, %28 : vector<8x10xf32>
    %cst_13 = arith.constant dense<0.000000e+00> : vector<8x8xf32>
    %30 = tpu.matmul %29, %14, %cst_13 {dimension_numbers = #tpu.dot_dimension_numbers<[1], [0], [0], [1], [0, 0, 1, 1], [], []>} : vector<8x10xf32>, vector<10x8xf32>, vector<8x8xf32> -> vector<8x8xf32>
    %31 = vector.extract_strided_slice %1 {offsets = [0, 8], sizes = [8, 8], strides = [1, 1]} : vector<8x32xf32> to vector<8x8xf32>
    %32 = vector.extract_strided_slice %4 {offsets = [0, 8], sizes = [10, 8], strides = [1, 1]} : vector<10x32xf32> to vector<10x8xf32>
    %33 = vector.extract_strided_slice %5 {offsets = [0, 8], sizes = [10, 8], strides = [1, 1]} : vector<10x32xf32> to vector<10x8xf32>
    %cst_14 = arith.constant dense<0.000000e+00> : vector<8x10xf32>
    %34 = tpu.matmul %31, %32, %cst_14 {dimension_numbers = #tpu.dot_dimension_numbers<[1], [1], [0], [0], [0, 0, 1, 0], [], []>} : vector<8x8xf32>, vector<10x8xf32>, vector<8x10xf32> -> vector<8x10xf32>
    %cst_15 = arith.constant 0.353553385 : f32
    %35 = vector.broadcast %cst_15 : f32 to vector<8x10xf32>
    %36 = arith.mulf %34, %35 : vector<8x10xf32>
    %37 = vector.broadcast %11 : vector<1x10xf32> to vector<8x10xf32>
    %38 = arith.addf %36, %37 : vector<8x10xf32>
    %cst_16 = arith.constant dense<0xFF800000> : vector<8xf32>
    %39 = vector.multi_reduction <maximumf>, %38, %cst_16 [1] : vector<8x10xf32> to vector<8xf32>
    %40 = vector.shape_cast %39 : vector<8xf32> to vector<8x1xf32>
    %41 = vector.broadcast %40 : vector<8x1xf32> to vector<8x10xf32>
    %42 = arith.subf %38, %41 : vector<8x10xf32>
    %43 = math.exp %42 : vector<8x10xf32>
    %cst_17 = arith.constant dense<0.000000e+00> : vector<8xf32>
    %44 = vector.multi_reduction <add>, %43, %cst_17 [1] : vector<8x10xf32> to vector<8xf32>
    %45 = vector.shape_cast %44 : vector<8xf32> to vector<8x1xf32>
    %46 = tpu.reciprocal %45 : vector<8x1xf32> -> vector<8x1xf32>
    %47 = vector.broadcast %46 : vector<8x1xf32> to vector<8x10xf32>
    %48 = arith.mulf %43, %47 : vector<8x10xf32>
    %cst_18 = arith.constant dense<0.000000e+00> : vector<8x8xf32>
    %49 = tpu.matmul %48, %33, %cst_18 {dimension_numbers = #tpu.dot_dimension_numbers<[1], [0], [0], [1], [0, 0, 1, 1], [], []>} : vector<8x10xf32>, vector<10x8xf32>, vector<8x8xf32> -> vector<8x8xf32>
    %50 = vector.extract_strided_slice %1 {offsets = [0, 16], sizes = [8, 8], strides = [1, 1]} : vector<8x32xf32> to vector<8x8xf32>
    %51 = vector.extract_strided_slice %4 {offsets = [0, 16], sizes = [10, 8], strides = [1, 1]} : vector<10x32xf32> to vector<10x8xf32>
    %52 = vector.extract_strided_slice %5 {offsets = [0, 16], sizes = [10, 8], strides = [1, 1]} : vector<10x32xf32> to vector<10x8xf32>
    %cst_19 = arith.constant dense<0.000000e+00> : vector<8x10xf32>
    %53 = tpu.matmul %50, %51, %cst_19 {dimension_numbers = #tpu.dot_dimension_numbers<[1], [1], [0], [0], [0, 0, 1, 0], [], []>} : vector<8x8xf32>, vector<10x8xf32>, vector<8x10xf32> -> vector<8x10xf32>
    %cst_20 = arith.constant 0.353553385 : f32
    %54 = vector.broadcast %cst_20 : f32 to vector<8x10xf32>
    %55 = arith.mulf %53, %54 : vector<8x10xf32>
    %56 = vector.broadcast %11 : vector<1x10xf32> to vector<8x10xf32>
    %57 = arith.addf %55, %56 : vector<8x10xf32>
    %cst_21 = arith.constant dense<0xFF800000> : vector<8xf32>
    %58 = vector.multi_reduction <maximumf>, %57, %cst_21 [1] : vector<8x10xf32> to vector<8xf32>
    %59 = vector.shape_cast %58 : vector<8xf32> to vector<8x1xf32>
    %60 = vector.broadcast %59 : vector<8x1xf32> to vector<8x10xf32>
    %61 = arith.subf %57, %60 : vector<8x10xf32>
    %62 = math.exp %61 : vector<8x10xf32>
    %cst_22 = arith.constant dense<0.000000e+00> : vector<8xf32>
    %63 = vector.multi_reduction <add>, %62, %cst_22 [1] : vector<8x10xf32> to vector<8xf32>
    %64 = vector.shape_cast %63 : vector<8xf32> to vector<8x1xf32>
    %65 = tpu.reciprocal %64 : vector<8x1xf32> -> vector<8x1xf32>
    %66 = vector.broadcast %65 : vector<8x1xf32> to vector<8x10xf32>
    %67 = arith.mulf %62, %66 : vector<8x10xf32>
    %cst_23 = arith.constant dense<0.000000e+00> : vector<8x8xf32>
    %68 = tpu.matmul %67, %52, %cst_23 {dimension_numbers = #tpu.dot_dimension_numbers<[1], [0], [0], [1], [0, 0, 1, 1], [], []>} : vector<8x10xf32>, vector<10x8xf32>, vector<8x8xf32> -> vector<8x8xf32>
    %69 = vector.extract_strided_slice %1 {offsets = [0, 24], sizes = [8, 8], strides = [1, 1]} : vector<8x32xf32> to vector<8x8xf32>
    %70 = vector.extract_strided_slice %4 {offsets = [0, 24], sizes = [10, 8], strides = [1, 1]} : vector<10x32xf32> to vector<10x8xf32>
    %71 = vector.extract_strided_slice %5 {offsets = [0, 24], sizes = [10, 8], strides = [1, 1]} : vector<10x32xf32> to vector<10x8xf32>
    %cst_24 = arith.constant dense<0.000000e+00> : vector<8x10xf32>
    %72 = tpu.matmul %69, %70, %cst_24 {dimension_numbers = #tpu.dot_dimension_numbers<[1], [1], [0], [0], [0, 0, 1, 0], [], []>} : vector<8x8xf32>, vector<10x8xf32>, vector<8x10xf32> -> vector<8x10xf32>
    %cst_25 = arith.constant 0.353553385 : f32
    %73 = vector.broadcast %cst_25 : f32 to vector<8x10xf32>
    %74 = arith.mulf %72, %73 : vector<8x10xf32>
    %75 = vector.broadcast %11 : vector<1x10xf32> to vector<8x10xf32>
    %76 = arith.addf %74, %75 : vector<8x10xf32>
    %cst_26 = arith.constant dense<0xFF800000> : vector<8xf32>
    %77 = vector.multi_reduction <maximumf>, %76, %cst_26 [1] : vector<8x10xf32> to vector<8xf32>
    %78 = vector.shape_cast %77 : vector<8xf32> to vector<8x1xf32>
    %79 = vector.broadcast %78 : vector<8x1xf32> to vector<8x10xf32>
    %80 = arith.subf %76, %79 : vector<8x10xf32>
    %81 = math.exp %80 : vector<8x10xf32>
    %cst_27 = arith.constant dense<0.000000e+00> : vector<8xf32>
    %82 = vector.multi_reduction <add>, %81, %cst_27 [1] : vector<8x10xf32> to vector<8xf32>
    %83 = vector.shape_cast %82 : vector<8xf32> to vector<8x1xf32>
    %84 = tpu.reciprocal %83 : vector<8x1xf32> -> vector<8x1xf32>
    %85 = vector.broadcast %84 : vector<8x1xf32> to vector<8x10xf32>
    %86 = arith.mulf %81, %85 : vector<8x10xf32>
    %cst_28 = arith.constant dense<0.000000e+00> : vector<8x8xf32>
    %87 = tpu.matmul %86, %71, %cst_28 {dimension_numbers = #tpu.dot_dimension_numbers<[1], [0], [0], [1], [0, 0, 1, 1], [], []>} : vector<8x10xf32>, vector<10x8xf32>, vector<8x8xf32> -> vector<8x8xf32>
    %88 = tpu.concatenate %30, %49, %68, %87 in 1 : vector<8x8xf32>, vector<8x8xf32>, vector<8x8xf32>, vector<8x8xf32> -> vector<8x32xf32>
    %c0_29 = arith.constant 0 : index
    %c0_30 = arith.constant 0 : index
    %89 = vector.load %arg5[%c0_29, %c0_30] : memref<32x32xf32, #tpu.memory_space<vmem>>, vector<32x32xf32>
    %cst_31 = arith.constant dense<0.000000e+00> : vector<8x32xf32>
    %90 = tpu.matmul %88, %89, %cst_31 {dimension_numbers = #tpu.dot_dimension_numbers<[1], [0], [0], [1], [0, 0, 1, 1], [], []>} : vector<8x32xf32>, vector<32x32xf32>, vector<8x32xf32> -> vector<8x32xf32>
    %c0_32 = arith.constant 0 : index
    %c0_33 = arith.constant 0 : index
    %91 = vector.load %arg6[%c0_32, %c0_33] : memref<1x32xf32, #tpu.memory_space<vmem>>, vector<1x32xf32>
    %92 = vector.broadcast %91 : vector<1x32xf32> to vector<8x32xf32>
    %93 = arith.addf %90, %92 : vector<8x32xf32>
    %c0_34 = arith.constant 0 : index
    %c0_35 = arith.constant 0 : index
    %c0_36 = arith.constant 0 : index
    %94 = vector.load %arg4[%c0_34, %c0_35, %c0_36] : memref<1x8x32xf32, #tpu.memory_space<vmem>>, vector<1x8x32xf32>
    %95 = vector.shape_cast %94 : vector<1x8x32xf32> to vector<8x32xf32>
    %96 = arith.addf %95, %93 : vector<8x32xf32>
    %c0_37 = arith.constant 0 : index
    %c0_38 = arith.constant 0 : index
    %c0_39 = arith.constant 0 : index
    %97 = vector.load %arg7[%c0_37, %c0_38, %c0_39] : memref<1x8x32xf32, #tpu.memory_space<vmem>>, vector<1x8x32xf32>
    %98 = vector.shape_cast %97 : vector<1x8x32xf32> to vector<8x32xf32>
    %99 = vector.shape_cast %96 : vector<8x32xf32> to vector<1x8x32xf32>
    tpu.vector_store %arg7[%c0_37, %c0_38, %c0_39], %99 {strides = array<i32>} : memref<1x8x32xf32, #tpu.memory_space<vmem>>, vector<1x8x32xf32>,
    return
  }
  func.func @transform_0(%arg0: i32) -> (i32, i32, i32) {
    %c0_i32 = arith.constant 0 : i32
    %c0_i32_0 = arith.constant 0 : i32
    %c0_i32_1 = arith.constant 0 : i32
    return %arg0, %c0_i32, %c0_i32_0 : i32, i32, i32
  }
  func.func @transform_1(%arg0: i32) -> (i32, i32, i32) {
    %c0_i32 = arith.constant 0 : i32
    %c0_i32_0 = arith.constant 0 : i32
    %c0_i32_1 = arith.constant 0 : i32
    return %arg0, %c0_i32, %c0_i32_0 : i32, i32, i32
  }
  func.func @transform_2(%arg0: i32) -> (i32, i32, i32) {
    %c0_i32 = arith.constant 0 : i32
    %c0_i32_0 = arith.constant 0 : i32
    %c0_i32_1 = arith.constant 0 : i32
    return %arg0, %c0_i32, %c0_i32_0 : i32, i32, i32
  }
  func.func @transform_3(%arg0: i32) -> (i32, i32, i32) {
    %c0_i32 = arith.constant 0 : i32
    %c0_i32_0 = arith.constant 0 : i32
    %c0_i32_1 = arith.constant 0 : i32
    return %arg0, %c0_i32, %c0_i32_0 : i32, i32, i32
  }
  func.func @transform_4(%arg0: i32) -> (i32, i32) {
    %c0_i32 = arith.constant 0 : i32
    %c0_i32_0 = arith.constant 0 : i32
    %c0_i32_1 = arith.constant 0 : i32
    return %c0_i32, %c0_i32_0 : i32, i32
  }
  func.func @transform_5(%arg0: i32) -> (i32, i32) {
    %c0_i32 = arith.constant 0 : i32
    %c0_i32_0 = arith.constant 0 : i32
    %c0_i32_1 = arith.constant 0 : i32
    return %c0_i32, %c0_i32_0 : i32, i32
  }
  func.func @transform_6(%arg0: i32) -> (i32, i32, i32) {
    %c0_i32 = arith.constant 0 : i32
    %c0_i32_0 = arith.constant 0 : i32
    %c0_i32_1 = arith.constant 0 : i32
    return %arg0, %c0_i32, %c0_i32_0 : i32, i32, i32
  }
}

</mosaic_0001>

<bundles_post_ra>
// kernel: decoder_forward.13
= control target key start
LH: loop header
LB: loop body
LE: loop exit
PB: predicated region body
PF: predicated region fallthrough
CT: control target
= control target key end

     0   :  { %vm22_vm0 = vcmask 261120   ;;  %v146_v4 = vmov 32.0   ;;  %vm123_vm8 = vcmask 785408   ;;  %s216_s0 = inlined_call_operand.vmem [shape: f32[16,32], index: 0, kind: input, shape index: {}]   ;;  %s217_s1 = inlined_call_operand.vmem [shape: f32[1,32], index: 1, kind: input, shape index: {}]   ;;  %s218_s2 = inlined_call_operand.vmem [shape: f32[1,32], index: 2, kind: input, shape index: {}]   ;;  %s219_s4 = inlined_call_operand.vmem [shape: f32[1,96], index: 4, kind: input, shape index: {}]   ;;  %s220_s3 = inlined_call_operand.vmem [shape: f32[32,96], index: 3, kind: input, shape index: {}]   ;;  %s221_s5 = inlined_call_operand.vmem [shape: f32[16,96], index: 5, kind: output, shape index: {}]  }
   0x1   :  { %v20_v0 = vld [vmem:[%s216_s0] sm:$0xff]  ;;  %v21_v2 = vld [vmem:[%s216_s0 + $0x8] sm:$0xff]  ;;  %140 = vrcp.f32 %v146_v4  ;;  %v89_v21 = vld [vmem:[%s220_s3 + $0x18] sm:$0xff] }
   0x2   :  { %v23_v1 = vsel %vm22_vm0, %v20_v0, 0.0  ;;  %v26_v3 = vsel %vm22_vm0, %v21_v2, 0.0  ;;  %112 = vmatpush.msra.mxu0 %v89_v21  ;;  %132 = vmatpush.msra.mxu1 %v89_v21  ;;  %v88_v22 = vld [vmem:[%s220_s3 + $0x10] sm:$0xff]  ;;  %v87_v23 = vld [vmem:[%s220_s3 + $0x8] sm:$0xff]  ;;  %v86_v24 = vld [vmem:[%s220_s3] sm:$0xff] }
   0x3   :  { %24 = vadd.xlane.f32.xlu0 %v23_v1  ;;  %v137_v39 = vld [vmem:[%s217_s1] ss:$0 sm:$0xff] }
   0x4   :  { %113 = vmatpush.msra.mxu0 %v88_v22  ;;  %133 = vmatpush.msra.mxu1 %v88_v22  ;;  %v138_v43 = vld [vmem:[%s218_s2] ss:$0 sm:$0xff] }
   0x5   :  { %v139_v53 = vld [vmem:[%s219_s4] ss:$0 sm:$0xff] }
   0x6   :  { %114 = vmatpush.msra.mxu0 %v87_v23  ;;  %134 = vmatpush.msra.mxu1 %v87_v23 }
   0x7   :  { %v141_v5 = vpop.eup %140 }
   0x8   :  { %v30_v6 = vmul.f32 32.0, %v141_v5  ;;  %vm34_vm1 = vweird.f32 %v141_v5  ;;  %115 = vmatpush.msra.mxu0 %v86_v24  ;;  %135 = vmatpush.msra.mxu1 %v86_v24 }
   0xa   :  { %v31_v7 = vsub.f32 1.0, %v30_v6 }
   0xb   :  { %27 = vadd.xlane.f32.xlu0 %v26_v3 }
   0xc   :  { %v32_v8 = vmul.f32 %v141_v5, %v31_v7 }
   0xe   :  { %v33_v9 = vadd.f32 %v141_v5, %v32_v8 }
  0x10   :  { %v35_v10 = vsel %vm34_vm1, %v141_v5, %v33_v9 }
  0x76   :  { %v25_v11 = vpop.xlane.xlu0 %24 }
  0x77   :  { %v36_v12 = vmul.f32 %v35_v10, %v25_v11 }
  0x79   :  { %v38_v13 = vsub.f32 %v20_v0, %v36_v12 }
  0x7b   :  { %v40_v14 = vmul.f32 %v38_v13, %v38_v13 }
  0x7d   :  { %v42_v15 = vsel %vm22_vm0, %v40_v14, 0.0 }
  0x7e   :  { %43 = vadd.xlane.f32.xlu1 %v42_v15  ;;  %v28_v16 = vpop.xlane.xlu0 %27 }
  0x7f   :  { %v37_v17 = vmul.f32 %v35_v10, %v28_v16 }
  0x81   :  { %v39_v18 = vsub.f32 %v21_v2, %v37_v17 }
  0x83   :  { %v41_v19 = vmul.f32 %v39_v18, %v39_v18 }
  0x85   :  { %v45_v20 = vsel %vm22_vm0, %v41_v19, 0.0 }
  0x86   :  { %46 = vadd.xlane.f32.xlu1 %v45_v20 }
  0xf1   :  { %v44_v25 = vpop.xlane.xlu1 %43 }
  0xf2   :  { %v48_v26 = vmul.f32 %v44_v25, %v35_v10 }
  0xf4   :  { %v50_v27 = vadd.f32 1e-06, %v48_v26 }
  0xf6   :  { %142 = vrsqrt.f32 %v50_v27  ;;  %vm58_vm3 = vweird.f32 %v50_v27 }
  0xf9   :  { %v47_v28 = vpop.xlane.xlu1 %46 }
  0xfa   :  { %v49_v29 = vmul.f32 %v47_v28, %v35_v10 }
  0xfc   :  { %v143_v30 = vpop.eup %142  ;;  %v51_v31 = vadd.f32 1e-06, %v49_v29 }
  0xfd   :  { %v53_v32 = vmul.f32 %v143_v30, %v50_v27  ;;  %vm59_vm2 = vweird.f32 %v143_v30 }
  0xfe   :  { %144 = vrsqrt.f32 %v51_v31  ;;  %vm60_vm4 = vmor %vm58_vm3, %vm59_vm2  ;;  %vm68_vm6 = vweird.f32 %v51_v31 }
  0xff   :  { %v54_v33 = vmul.f32 %v143_v30, %v53_v32 }
 0x101   :  { %v55_v34 = vmul.f32 0.5, %v54_v33 }
 0x103   :  { %v56_v35 = vsub.f32 1.5, %v55_v34 }
 0x104   :  { %v145_v36 = vpop.eup %144 }
 0x105   :  { %v57_v37 = vmul.f32 %v143_v30, %v56_v35  ;;  %v63_v38 = vmul.f32 %v145_v36, %v51_v31  ;;  %vm69_vm5 = vweird.f32 %v145_v36 }
 0x106   :  { %vm70_vm7 = vmor %vm68_vm6, %vm69_vm5 }
 0x107   :  { %v61_v40 = vsel %vm60_vm4, %v143_v30, %v57_v37  ;;  %v64_v41 = vmul.f32 %v145_v36, %v63_v38 }
 0x108   :  { %v72_v42 = vmul.f32 %v61_v40, %v38_v13 }
 0x109   :  { %v65_v44 = vmul.f32 0.5, %v64_v41 }
 0x10a   :  { %v78_v45 = vmul.f32 %v137_v39, %v72_v42 }
 0x10b   :  { %v66_v46 = vsub.f32 1.5, %v65_v44 }
 0x10c   :  { %v84_v47 = vadd.f32 %v138_v43, %v78_v45 }
 0x10d   :  { %v67_v48 = vmul.f32 %v145_v36, %v66_v46 }
 0x10e   :  { %130 = vmatmul.msk.f32.vlgmr.msra.gmra.mxu0 %vm22_vm0, %v84_v47 }
 0x10f   :  { %v71_v49 = vsel %vm70_vm7, %v145_v36, %v67_v48 }
 0x110   :  { %v73_v50 = vmul.f32 %v71_v49, %v39_v18 }
 0x112   :  { %v79_v51 = vmul.f32 %v137_v39, %v73_v50 }
 0x114   :  { %v85_v52 = vadd.f32 %v138_v43, %v79_v51 }
 0x116   :  { %131 = vmatmul.msk.f32.vlgmr.msra.gmra.mxu1 %vm22_vm0, %v85_v52 }
 0x18b   :  { %v117_v54 = vpop.f32.mrf.mxu0 }
 0x18c   :  { %v118_v55 = vadd.f32 %v139_v53, %v117_v54 }
 0x18e   :  { %124 = vst.msk [vmem:[%s221_s5] sm:$0xff] %vm123_vm8, %v118_v55 }
 0x193   :  { %v120_v56 = vpop.f32.mrf.mxu1 }
 0x194   :  { %v121_v57 = vadd.f32 %v139_v53, %v120_v56 }
 0x196   :  { %125 = vst.msk [vmem:[%s221_s5 + $0x8] sm:$0xff] %vm123_vm8, %v121_v57 }

// kernel: decoder_forward.15
= control target key start
LH: loop header
LB: loop body
LE: loop exit
PB: predicated region body
PF: predicated region fallthrough
CT: control target
= control target key end

     0   :  { %vm22_vm0 = vcmask 261120   ;;  %v145_v4 = vmov 32.0   ;;  %s217_s0 = inlined_call_operand.vmem [shape: f32[16,32], index: 0, kind: input, shape index: {}]   ;;  %s218_s1 = inlined_call_operand.vmem [shape: f32[1,32], index: 1, kind: input, shape index: {}]   ;;  %s219_s2 = inlined_call_operand.vmem [shape: f32[1,32], index: 2, kind: input, shape index: {}]   ;;  %s220_s4 = inlined_call_operand.vmem [shape: f32[1,32], index: 4, kind: input, shape index: {}]   ;;  %s221_s3 = inlined_call_operand.vmem [shape: f32[32,32], index: 3, kind: input, shape index: {}]   ;;  %s222_s5 = inlined_call_operand.vmem [shape: f32[16,32], index: 5, kind: output, shape index: {}]  }
   0x1   :  { %v20_v0 = vld [vmem:[%s217_s0] sm:$0xff]  ;;  %v21_v2 = vld [vmem:[%s217_s0 + $0x8] sm:$0xff]  ;;  %139 = vrcp.f32 %v145_v4  ;;  %v89_v21 = vld [vmem:[%s221_s3 + $0x18] sm:$0xff] }
   0x2   :  { %v23_v1 = vsel %vm22_vm0, %v20_v0, 0.0  ;;  %v26_v3 = vsel %vm22_vm0, %v21_v2, 0.0  ;;  %112 = vmatpush.msra.mxu0 %v89_v21  ;;  %131 = vmatpush.msra.mxu1 %v89_v21  ;;  %v88_v22 = vld [vmem:[%s221_s3 + $0x10] sm:$0xff]  ;;  %v87_v23 = vld [vmem:[%s221_s3 + $0x8] sm:$0xff]  ;;  %v86_v24 = vld [vmem:[%s221_s3] sm:$0xff] }
   0x3   :  { %24 = vadd.xlane.f32.xlu0 %v23_v1  ;;  %v136_v39 = vld [vmem:[%s218_s1] ss:$0 sm:$0xff] }
   0x4   :  { %113 = vmatpush.msra.mxu0 %v88_v22  ;;  %132 = vmatpush.msra.mxu1 %v88_v22  ;;  %v137_v43 = vld [vmem:[%s219_s2] ss:$0 sm:$0xff] }
   0x5   :  { %v138_v53 = vld [vmem:[%s220_s4] ss:$0 sm:$0xff] }
   0x6   :  { %114 = vmatpush.msra.mxu0 %v87_v23  ;;  %133 = vmatpush.msra.mxu1 %v87_v23 }
   0x7   :  { %v140_v5 = vpop.eup %139 }
   0x8   :  { %v30_v6 = vmul.f32 32.0, %v140_v5  ;;  %vm34_vm1 = vweird.f32 %v140_v5  ;;  %115 = vmatpush.msra.mxu0 %v86_v24  ;;  %134 = vmatpush.msra.mxu1 %v86_v24 }
   0xa   :  { %v31_v7 = vsub.f32 1.0, %v30_v6 }
   0xb   :  { %27 = vadd.xlane.f32.xlu0 %v26_v3 }
   0xc   :  { %v32_v8 = vmul.f32 %v140_v5, %v31_v7 }
   0xe   :  { %v33_v9 = vadd.f32 %v140_v5, %v32_v8 }
  0x10   :  { %v35_v10 = vsel %vm34_vm1, %v140_v5, %v33_v9 }
  0x76   :  { %v25_v11 = vpop.xlane.xlu0 %24 }
  0x77   :  { %v36_v12 = vmul.f32 %v35_v10, %v25_v11 }
  0x79   :  { %v38_v13 = vsub.f32 %v20_v0, %v36_v12 }
  0x7b   :  { %v40_v14 = vmul.f32 %v38_v13, %v38_v13 }
  0x7d   :  { %v42_v15 = vsel %vm22_vm0, %v40_v14, 0.0 }
  0x7e   :  { %43 = vadd.xlane.f32.xlu1 %v42_v15  ;;  %v28_v16 = vpop.xlane.xlu0 %27 }
  0x7f   :  { %v37_v17 = vmul.f32 %v35_v10, %v28_v16 }
  0x81   :  { %v39_v18 = vsub.f32 %v21_v2, %v37_v17 }
  0x83   :  { %v41_v19 = vmul.f32 %v39_v18, %v39_v18 }
  0x85   :  { %v45_v20 = vsel %vm22_vm0, %v41_v19, 0.0 }
  0x86   :  { %46 = vadd.xlane.f32.xlu1 %v45_v20 }
  0xf1   :  { %v44_v25 = vpop.xlane.xlu1 %43 }
  0xf2   :  { %v48_v26 = vmul.f32 %v44_v25, %v35_v10 }
  0xf4   :  { %v50_v27 = vadd.f32 1e-06, %v48_v26 }
  0xf6   :  { %141 = vrsqrt.f32 %v50_v27  ;;  %vm58_vm3 = vweird.f32 %v50_v27 }
  0xf9   :  { %v47_v28 = vpop.xlane.xlu1 %46 }
  0xfa   :  { %v49_v29 = vmul.f32 %v47_v28, %v35_v10 }
  0xfc   :  { %v142_v30 = vpop.eup %141  ;;  %v51_v31 = vadd.f32 1e-06, %v49_v29 }
  0xfd   :  { %v53_v32 = vmul.f32 %v142_v30, %v50_v27  ;;  %vm59_vm2 = vweird.f32 %v142_v30 }
  0xfe   :  { %143 = vrsqrt.f32 %v51_v31  ;;  %vm60_vm4 = vmor %vm58_vm3, %vm59_vm2  ;;  %vm68_vm6 = vweird.f32 %v51_v31 }
  0xff   :  { %v54_v33 = vmul.f32 %v142_v30, %v53_v32 }
 0x101   :  { %v55_v34 = vmul.f32 0.5, %v54_v33 }
 0x103   :  { %v56_v35 = vsub.f32 1.5, %v55_v34 }
 0x104   :  { %v144_v36 = vpop.eup %143 }
 0x105   :  { %v57_v37 = vmul.f32 %v142_v30, %v56_v35  ;;  %v63_v38 = vmul.f32 %v144_v36, %v51_v31  ;;  %vm69_vm5 = vweird.f32 %v144_v36 }
 0x106   :  { %vm70_vm7 = vmor %vm68_vm6, %vm69_vm5 }
 0x107   :  { %v61_v40 = vsel %vm60_vm4, %v142_v30, %v57_v37  ;;  %v64_v41 = vmul.f32 %v144_v36, %v63_v38 }
 0x108   :  { %v72_v42 = vmul.f32 %v61_v40, %v38_v13 }
 0x109   :  { %v65_v44 = vmul.f32 0.5, %v64_v41 }
 0x10a   :  { %v78_v45 = vmul.f32 %v136_v39, %v72_v42 }
 0x10b   :  { %v66_v46 = vsub.f32 1.5, %v65_v44 }
 0x10c   :  { %v84_v47 = vadd.f32 %v137_v43, %v78_v45 }
 0x10d   :  { %v67_v48 = vmul.f32 %v144_v36, %v66_v46 }
 0x10e   :  { %129 = vmatmul.msk.f32.vlgmr.msra.gmra.mxu0 %vm22_vm0, %v84_v47 }
 0x10f   :  { %v71_v49 = vsel %vm70_vm7, %v144_v36, %v67_v48 }
 0x110   :  { %v73_v50 = vmul.f32 %v71_v49, %v39_v18 }
 0x112   :  { %v79_v51 = vmul.f32 %v136_v39, %v73_v50 }
 0x114   :  { %v85_v52 = vadd.f32 %v137_v43, %v79_v51 }
 0x116   :  { %130 = vmatmul.msk.f32.vlgmr.msra.gmra.mxu1 %vm22_vm0, %v85_v52 }
 0x18b   :  { %v117_v54 = vpop.f32.mrf.mxu0 }
 0x18c   :  { %v118_v55 = vadd.f32 %v138_v53, %v117_v54 }
 0x18e   :  { %123 = vst.msk [vmem:[%s222_s5] sm:$0xff] %vm22_vm0, %v118_v55 }
 0x193   :  { %v120_v56 = vpop.f32.mrf.mxu1 }
 0x194   :  { %v121_v57 = vadd.f32 %v138_v53, %v120_v56 }
 0x196   :  { %124 = vst.msk [vmem:[%s222_s5 + $0x8] sm:$0xff] %vm22_vm0, %v121_v57 }

// kernel: decoder_forward.16
= control target key start
LH: loop header
LB: loop body
LE: loop exit
PB: predicated region body
PF: predicated region fallthrough
CT: control target
= control target key end

     0   :  { %vm31_vm0 = vcmask 261120   ;;  %vm67_vm1 = vcmask 523264   ;;  %vm70_vm2 = vcmask 519168   ;;  %s151_s3 = inlined_call_operand.vmem [shape: f32[32,64], index: 3, kind: input, shape index: {}]   ;;  %s152_s1 = inlined_call_operand.vmem [shape: f32[1,32], index: 1, kind: input, shape index: {}]   ;;  %s153_s2 = inlined_call_operand.vmem [shape: f32[1,32], index: 2, kind: input, shape index: {}]   ;;  %s154_s4 = inlined_call_operand.vmem [shape: f32[1,64], index: 4, kind: input, shape index: {}]   ;;  %s155_s0 = inlined_call_operand.vmem [shape: f32[20,32], index: 0, kind: input, shape index: {}]   ;;  %s156_s5 = inlined_call_operand.vmem [shape: f32[20,64], index: 5, kind: output, shape index: {}]  }
   0x1   :  { %v26_v0 = vld [vmem:[%s151_s3 + $0x18] sm:$0xff]  ;;  %v25_v1 = vld [vmem:[%s151_s3 + $0x10] sm:$0xff]  ;;  %v24_v2 = vld [vmem:[%s151_s3 + $0x8] sm:$0xff] }
   0x2   :  { %80 = vmatpush.msra.mxu2 %v26_v0  ;;  %53 = vmatpush.msra.mxu0 %v26_v0  ;;  %v23_v3 = vld [vmem:[%s151_s3] sm:$0xff]  ;;  %v22_v4 = vld [vmem:[%s155_s0 + $0x10] sm:$0xf]  ;;  %v21_v6 = vld [vmem:[%s155_s0 + $0x8] sm:$0xff] }
   0x3   :  { %79 = vmatpush.msra.mxu1 %v26_v0  ;;  %v20_v5 = vld [vmem:[%s155_s0] sm:$0xff] }
   0x4   :  { %82 = vmatpush.msra.mxu2 %v25_v1  ;;  %54 = vmatpush.msra.mxu0 %v25_v1  ;;  %v87_v7 = vld [vmem:[%s154_s4] ss:$0 sm:$0xff] }
   0x5   :  { %81 = vmatpush.msra.mxu1 %v25_v1 }
   0x6   :  { %84 = vmatpush.msra.mxu2 %v24_v2  ;;  %55 = vmatpush.msra.mxu0 %v24_v2 }
   0x7   :  { %83 = vmatpush.msra.mxu1 %v24_v2 }
   0x8   :  { %86 = vmatpush.msra.mxu2 %v23_v3  ;;  %56 = vmatpush.msra.mxu0 %v23_v3 }
   0x9   :  { %78 = vmatmul.msk.f32.vlgmr.msra.gmra.mxu2 %vm31_vm0, %v22_v4  ;;  %85 = vmatpush.msra.mxu1 %v23_v3 }
   0xa   :  { %76 = vmatmul.msk.f32.vlgmr.msra.gmra.mxu0 %vm31_vm0, %v20_v5  ;;  %77 = vmatmul.msk.f32.vlgmr.msra.gmra.mxu1 %vm31_vm0, %v21_v6 }
  0x87   :  { %v58_v8 = vpop.f32.mrf.mxu0  ;;  %v61_v9 = vpop.f32.mrf.mxu1 }
  0x88   :  { %v59_v10 = vadd.f32 %v87_v7, %v58_v8  ;;  %v62_v11 = vadd.f32 %v87_v7, %v61_v9 }
  0x8a   :  { %68 = vst.msk [vmem:[%s156_s5] sm:$0xff] %vm67_vm1, %v59_v10 }
  0x8b   :  { %69 = vst.msk [vmem:[%s156_s5 + $0x8] sm:$0xff] %vm67_vm1, %v62_v11 }
  0x8c   :  { %v64_v12 = vpop.f32.mrf.mxu2 }
  0x8d   :  { %v65_v13 = vadd.f32 %v87_v7, %v64_v12 }
  0x8f   :  { %71 = vst.msk [vmem:[%s156_s5 + $0x10] sm:$0xf] %vm70_vm2, %v65_v13 }

// kernel: decoder_forward.14
= control target key start
LH: loop header
LB: loop body
LE: loop exit
PB: predicated region body
PF: predicated region fallthrough
CT: control target
= control target key end

     0   :  { %s822_s18 = smov 0   ;;  %s910_s0 = inlined_call_operand.vmem [shape: f32[2,8,96], index: 0, kind: input, shape index: {}]   ;;  %s911_s1 = inlined_call_operand.vmem [shape: f32[2,8,8], index: 1, kind: input, shape index: {}]   ;;  %s912_s2 = inlined_call_operand.vmem [shape: f32[2,8,32], index: 2, kind: input, shape index: {}]   ;;  %s913_s3 = inlined_call_operand.vmem [shape: f32[32,32], index: 3, kind: input, shape index: {}]   ;;  %s914_s4 = inlined_call_operand.vmem [shape: f32[1,32], index: 4, kind: input, shape index: {}]   ;;  %s915_s5 = inlined_call_operand.vmem [shape: f32[2,8,32], index: 5, kind: output, shape index: {}]  }
   0x1 LB: > { %s707_s19 = sadd.s32 4294967295, %s776_s18   ;;  %p711_p0 = scmp.ge.s32.totalorder %s776_s18, 1  ;;  %s776_s18 = sphi %s822_s18, %s15_s18  }
   0x2   : > { %p204_p1 = scmp.lt.s32.totalorder %s776_s18, 3 }
   0x4   : > { %p205_p2 = pnand %p711_p0, %p204_p1 }
   0x5   : > { %p238_p3 = scmp.lt.s32.totalorder (!%p205_p2), %s707_s19, 1  ;;  %s778_s24 = smov (!%p205_p2), 96  }
   0x6   : > { %208 = sbr.rel (%p205_p2) target bundleno = 1305 (0x519), region = 40  ;;  %s779_s25 = smov (!%p205_p2), 88  }
   0x7   : > { %s780_s26 = smov (!%p205_p2), 120   ;;  %s781_s30 = smov (!%p205_p2), 64  }
   0x8   : > { %s782_s6 = smov (!%p205_p2), 80   ;;  %s783_s7 = smov (!%p205_p2), 72  }
   0x9   : > { %s784_s8 = smov (!%p205_p2), 112   ;;  %s785_s9 = smov (!%p205_p2), 104  }
   0xa   : > { %s786_s10 = smov (!%p205_p2), 56   ;;  %s787_s11 = smov (!%p205_p2), 40  }
   0xb   : > { %s917_s19 = smov (!%p238_p3, %s707_s19), 1  ;;  %vm261_vm0 = vcmask 64512   ;;  %s788_s12 = smov 48  }
   0xc   : > { %s830_s20 = sshll.u32 %s917_s19, 3  ;;  %s789_s13 = smov 8  }
   0xd   : > { %s241_s23 = scalar_lea.vmem %s910_s0, %s830_s20  ;;  %s245_s29 = scalar_lea.vmem %s911_s1, %s830_s20 }
   0xe   : > { %v836_v0 = vld [vmem:[%s241_s23] sm:$0xff]  ;;  %s790_s14 = smov 24   ;;  %s791_s15 = smov 16  }
   0xf   : > { %259 = vrot.lane.b32.xlu0 %v836_v0, %s778_s24  ;;  %340 = vrot.lane.b32.xlu1 %v836_v0, %s779_s25  ;;  %v255_v2 = vld [vmem:[%s245_s29] sm:$0xff]  ;;  %s249_s28 = scalar_lea.vmem %s912_s2, %s830_s20 }
  0x10   : > { %338 = vrot.lane.b32.xlu2 %v836_v0, %s780_s26  ;;  %v256_v4 = vsub.f32 1.0, %v255_v2 }
  0x12   : > { %v849_v5 = vmul.f32 -1e+09, %v256_v4 }
  0x18   : > { %312 = vrot.lane.b32.xlu2 %v836_v0, %s781_s30 }
  0x20   : > { %420 = vrot.lane.b32.xlu2 %v836_v0, %s782_s6 }
  0x28   : > { %500 = vrot.lane.b32.xlu2 %v836_v0, %s783_s7 }
  0x30   : > { %418 = vrot.lane.b32.xlu2 %v836_v0, %s784_s8  ;;  %s253_s8 = scalar_lea.vmem %s915_s5, %s830_s20 }
  0x6a   : > { %v339_v10 = vpop.permute.xlu2 %338 }
  0x72   : > { %v313_v14 = vpop.permute.xlu2 %312 }
  0x73   : > { %333 = vmatpush.msra.mxu1 %v313_v14 }
  0x7a   : > { %v421_v17 = vpop.permute.xlu2 %420 }
  0x7b   : > { %722 = vmatpush.xpose.msk.msrb.mxu1 %vm261_vm0, %v421_v17 }
  0x81   : > { %v260_v1 = vpop.permute.xlu0 %259  ;;  %v341_v3 = vpop.permute.xlu1 %340 }
  0x82   : > { %716 = vmatpush.xpose.msk.msra.mxu0 %vm261_vm0, %v260_v1  ;;  %719 = vmatpush.xpose.msk.msra.mxu2 %vm261_vm0, %v341_v3  ;;  %v501_v22 = vpop.permute.xlu2 %500 }
  0x85   : > { %717 = vmatmul.msk.f32.vlgmr.msra.gmra.mxu0 %vm261_vm0, %v836_v0  ;;  %720 = vmatmul.msk.f32.vlgmr.msra.gmra.mxu2 %vm261_vm0, %v339_v10 }
  0x86   : > { %725 = vmatpush.xpose.msk.msrb.mxu0 %vm261_vm0, %v501_v22 }
  0x8a   : > { %v419_v36 = vpop.permute.xlu2 %418 }
 0x102   : > { %v283_v6 = vpop.f32.mrf.mxu0 }
 0x103   : > { %v286_v7 = vmul.f32 0.35355338, %v283_v6 }
 0x105   : > { %v287_v8 = vadd.f32 %v286_v7, %v849_v5 }
 0x107   : > { %v288_v9 = vsel %vm261_vm0, %v287_v8, -inf }
 0x108   : > { %289 = vmax.xlane.f32.xlu0 %v288_v9  ;;  %v363_v18 = vpop.f32.mrf.mxu2 }
 0x109   : > { %v366_v19 = vmul.f32 0.35355338, %v363_v18 }
 0x10b   : > { %v367_v20 = vadd.f32 %v366_v19, %v849_v5 }
 0x10d   : > { %v368_v21 = vsel %vm261_vm0, %v367_v20, -inf }
 0x10e   : > { %369 = vmax.xlane.f32.xlu2 %v368_v21 }
 0x126   : > { %392 = vrot.lane.b32.xlu2 %v836_v0, %s786_s10 }
 0x17b   : > { %v290_v11 = vpop.xlane.xlu0 %289 }
 0x17c   : > { %v291_v12 = vsub.f32 %v287_v8, %v290_v11 }
 0x17e   : > { %v292_v13 = vmul.f32 1.442695, %v291_v12 }
 0x180   : > { %754 = vpow2.f32 %v292_v13 }
 0x181   : > { %v370_v37 = vpop.xlane.xlu2 %369 }
 0x182   : > { %v371_v39 = vsub.f32 %v367_v20, %v370_v37 }
 0x184   : > { %v372_v40 = vmul.f32 1.442695, %v371_v39 }
 0x186   : > { %v755_v15 = vpop.eup %754 }
 0x187   : > { %v294_v16 = vsel %vm261_vm0, %v755_v15, 0.0 }
 0x188   : > { %295 = vadd.xlane.f32.xlu1 %v294_v16 }
 0x189   : > { %v393_v51 = vpop.permute.xlu2 %392 }
 0x18a   : > { %413 = vmatpush.msra.mxu3 %v393_v51 }
 0x1a1   : > { %498 = vrot.lane.b32.xlu1 %v836_v0, %s785_s9 }
 0x1fb   : > { %v296_v23 = vpop.xlane.xlu1 %295 }
 0x1fc   : > { %756 = vrcp.f32 %v296_v23  ;;  %v308_v27 = vand.u32 2147483648, %v296_v23  ;;  %v306_v29 = vand.u32 2147483647, %v296_v23  ;;  %vm302_vm2 = vweird.f32 %v296_v23 }
 0x1fd   : > { %758 = vpow2.f32 %v372_v40  ;;  %v598_v40 = vld [vmem:[%s913_s3 + $0x18] sm:$0xff] }
 0x1fe   : > { %v309_v31 = vor.u32 1.1754944e-38, %v308_v27  ;;  %vm307_vm4 = vcmp.eq.f32.partialorder %v306_v29, 8.507059e+37 }
 0x202   : > { %v757_v24 = vpop.eup %756 }
 0x203   : > { %v298_v25 = vmul.f32 %v757_v24, %v296_v23  ;;  %vm303_vm1 = vweird.f32 %v757_v24  ;;  %v759_v49 = vpop.eup %758 }
 0x204   : > { %vm304_vm3 = vmor %vm302_vm2, %vm303_vm1  ;;  %v374_v50 = vsel %vm261_vm0, %v759_v49, 0.0  ;;  %vm591_vm2 = vcmask 130048  }
 0x205   : > { %v299_v26 = vsub.f32 1.0, %v298_v25 }
 0x207   : > { %v300_v28 = vmul.f32 %v757_v24, %v299_v26 }
 0x209   : > { %v301_v30 = vadd.f32 %v757_v24, %v300_v28 }
 0x20b   : > { %v305_v32 = vsel %vm304_vm3, %v757_v24, %v301_v30  ;;  %vm593_vm3 = vcmask 195584  }
 0x20c   : > { %v310_v33 = vsel %vm307_vm4, %v309_v31, %v305_v32  ;;  %vm603_vm4 = vcmask 261120  }
 0x20d   : > { %v311_v34 = vmul.f32 %v755_v15, %v310_v33 }
 0x20f   : > { %718 = vmatmul.msk.f32.vlgmr.msra.gmra.mxu1 %vm261_vm0, %v311_v34 }
 0x210   : > { %619 = vmatpush.msra.mxu1 %v598_v40 }
 0x213   : > { %v499_v35 = vpop.permute.xlu1 %498 }
 0x214   : > { %726 = vmatmul.msk.f32.vlgmr.msrb.gmra.mxu0 %vm261_vm0, %v499_v35 }
 0x217   : > { %723 = vmatmul.msk.f32.vlgmr.msrb.gmra.mxu1 %vm261_vm0, %v419_v36 }
 0x28c   : > { %v868_v38 = vpop.f32.mrf.mxu1 }
 0x291   : > { %v523_v41 = vpop.f32.mrf.mxu0 }
 0x292   : > { %v526_v42 = vmul.f32 0.35355338, %v523_v41  ;;  %v597_v41 = vld [vmem:[%s913_s3 + $0x10] sm:$0xff] }
 0x293   : > { %620 = vmatpush.msra.mxu1 %v597_v41 }
 0x294   : > { %v527_v43 = vadd.f32 %v526_v42, %v849_v5  ;;  %v443_v44 = vpop.f32.mrf.mxu1  ;;  %v596_v42 = vld [vmem:[%s913_s3 + $0x8] sm:$0xff] }
 0x295   : > { %v446_v45 = vmul.f32 0.35355338, %v443_v44  ;;  %621 = vmatpush.msra.mxu1 %v596_v42 }
 0x296   : > { %v528_v46 = vsel %vm261_vm0, %v527_v43, -inf }
 0x297   : > { %529 = vmax.xlane.f32.xlu0 %v528_v46  ;;  %v447_v47 = vadd.f32 %v446_v45, %v849_v5 }
 0x299   : > { %v448_v48 = vsel %vm261_vm0, %v447_v47, -inf }
 0x29a   : > { %449 = vmax.xlane.f32.xlu1 %v448_v48 }
 0x29f   : > { %375 = vadd.xlane.f32.xlu0 %v374_v50  ;;  %v753_v50 = vld [vmem:[%s914_s4] ss:$0 sm:$0xff] }
 0x2b3   : > { %552 = vrot.lane.b32.xlu1 %v836_v0, %s787_s11 }
 0x30a   : > { %v530_v52 = vpop.xlane.xlu0 %529 }
 0x30b   : > { %v531_v53 = vsub.f32 %v527_v43, %v530_v52  ;;  %v595_v43 = vld [vmem:[%s913_s3] sm:$0xff] }
 0x30c   : > { %622 = vmatpush.msra.mxu1 %v595_v43  ;;  %v627_v52 = vld [vmem:[%s249_s28] sm:$0xff] }
 0x30d   : > { %v532_v54 = vmul.f32 1.442695, %v531_v53  ;;  %v450_v55 = vpop.xlane.xlu1 %449 }
 0x30e   : > { %v451_v56 = vsub.f32 %v447_v47, %v450_v55 }
 0x30f   : > { %760 = vpow2.f32 %v532_v54 }
 0x310   : > { %v452_v57 = vmul.f32 1.442695, %v451_v56 }
 0x312   : > { %v376_v58 = vpop.xlane.xlu0 %375 }
 0x313   : > { %762 = vrcp.f32 %v376_v58  ;;  %v388_v2 = vand.u32 2147483648, %v376_v58  ;;  %v386_v5 = vand.u32 2147483647, %v376_v58  ;;  %vm382_vm6 = vweird.f32 %v376_v58 }
 0x314   : > { %764 = vpow2.f32 %v452_v57 }
 0x315   : > { %v761_v59 = vpop.eup %760  ;;  %v389_v7 = vor.u32 1.1754944e-38, %v388_v2  ;;  %vm387_vm8 = vcmp.eq.f32.partialorder %v386_v5, 8.507059e+37 }
 0x316   : > { %v534_v60 = vsel %vm261_vm0, %v761_v59, 0.0 }
 0x317   : > { %535 = vadd.xlane.f32.xlu0 %v534_v60 }
 0x319   : > { %v763_v61 = vpop.eup %762 }
 0x31a   : > { %v378_v62 = vmul.f32 %v763_v61, %v376_v58  ;;  %v765_v63 = vpop.eup %764  ;;  %vm383_vm5 = vweird.f32 %v763_v61 }
 0x31b   : > { %v454_v4 = vsel %vm261_vm0, %v765_v63, 0.0  ;;  %vm384_vm7 = vmor %vm382_vm6, %vm383_vm5 }
 0x31c   : > { %v379_v1 = vsub.f32 1.0, %v378_v62 }
 0x31e   : > { %v380_v3 = vmul.f32 %v763_v61, %v379_v1 }
 0x31f   : > { %455 = vadd.xlane.f32.xlu0 %v454_v4 }
 0x320   : > { %v381_v6 = vadd.f32 %v763_v61, %v380_v3 }
 0x322   : > { %v385_v8 = vsel %vm384_vm7, %v763_v61, %v381_v6 }
 0x323   : > { %v390_v9 = vsel %vm387_vm8, %v389_v7, %v385_v8 }
 0x324   : > { %v391_v10 = vmul.f32 %v759_v49, %v390_v9 }
 0x325   : > { %v553_v11 = vpop.permute.xlu1 %552 }
 0x326   : > { %721 = vmatmul.msk.f32.vlgmr.msra.gmra.mxu3 %vm261_vm0, %v391_v10  ;;  %573 = vmatpush.msrb.mxu2 %v553_v11 }
 0x333   : > { %472 = vrot.lane.b32.xlu0 %v836_v0, %s788_s12 }
 0x38a   : > { %v536_v12 = vpop.xlane.xlu0 %535 }
 0x38b   : > { %766 = vrcp.f32 %v536_v12  ;;  %v548_v17 = vand.u32 2147483648, %v536_v12  ;;  %v546_v19 = vand.u32 2147483647, %v536_v12  ;;  %vm542_vm10 = vweird.f32 %v536_v12 }
 0x38d   : > { %v549_v22 = vor.u32 1.1754944e-38, %v548_v17  ;;  %vm547_vm12 = vcmp.eq.f32.partialorder %v546_v19, 8.507059e+37 }
 0x391   : > { %v767_v13 = vpop.eup %766 }
 0x392   : > { %v538_v14 = vmul.f32 %v767_v13, %v536_v12  ;;  %v456_v15 = vpop.xlane.xlu0 %455  ;;  %vm543_vm9 = vweird.f32 %v767_v13 }
 0x393   : > { %768 = vrcp.f32 %v456_v15  ;;  %vm544_vm11 = vmor %vm542_vm10, %vm543_vm9  ;;  %v468_v27 = vand.u32 2147483648, %v456_v15  ;;  %v466_v29 = vand.u32 2147483647, %v456_v15  ;;  %vm462_vm14 = vweird.f32 %v456_v15 }
 0x394   : > { %v539_v16 = vsub.f32 1.0, %v538_v14 }
 0x395   : > { %v469_v31 = vor.u32 1.1754944e-38, %v468_v27  ;;  %vm467_vm1 = vcmp.eq.f32.partialorder %v466_v29, 8.507059e+37 }
 0x396   : > { %v540_v18 = vmul.f32 %v767_v13, %v539_v16 }
 0x398   : > { %v541_v20 = vadd.f32 %v767_v13, %v540_v18 }
 0x399   : > { %v769_v21 = vpop.eup %768 }
 0x39a   : > { %v458_v0 = vmul.f32 %v769_v21, %v456_v15  ;;  %v545_v23 = vsel %vm544_vm11, %v767_v13, %v541_v20  ;;  %vm463_vm13 = vweird.f32 %v769_v21 }
 0x39b   : > { %v550_v24 = vsel %vm547_vm12, %v549_v22, %v545_v23  ;;  %vm464_vm15 = vmor %vm462_vm14, %vm463_vm13 }
 0x39c   : > { %v459_v25 = vsub.f32 1.0, %v458_v0  ;;  %v551_v26 = vmul.f32 %v761_v59, %v550_v24 }
 0x39e   : > { %v460_v28 = vmul.f32 %v769_v21, %v459_v25  ;;  %727 = vmatmul.msk.f32.vlgmr.msrb.gmra.mxu2 %vm261_vm0, %v551_v26 }
 0x3a0   : > { %v461_v30 = vadd.f32 %v769_v21, %v460_v28 }
 0x3a2   : > { %v465_v32 = vsel %vm464_vm15, %v769_v21, %v461_v30 }
 0x3a3   : > { %v470_v33 = vsel %vm467_vm1, %v469_v31, %v465_v32 }
 0x3a4   : > { %v471_v34 = vmul.f32 %v765_v63, %v470_v33 }
 0x3a5   : > { %v473_v35 = vpop.permute.xlu0 %472 }
 0x3a6   : > { %493 = vmatpush.msrb.mxu3 %v473_v35 }
 0x3a7   : > { %724 = vmatmul.msk.f32.vlgmr.msrb.gmra.mxu3 %vm261_vm0, %v471_v34 }
 0x3a9   : > { %v415_v36 = vpop.f32.mrf.mxu3 }
 0x3aa   : > { %579 = vrot.lane.b32.xlu0 %v415_v36, %s789_s13 }
 0x41c   : > { %v580_v44 = vpop.permute.xlu0 %579 }
 0x41d   : > { %v590_v46 = vsel %vm261_vm0, %v868_v38, %v580_v44 }
 0x421   : > { %v575_v37 = vpop.f32.mrf.mxu2 }
 0x422   : > { %587 = vrot.lane.b32.xlu1 %v575_v37, %s790_s14 }
 0x42a   : > { %v495_v39 = vpop.f32.mrf.mxu3 }
 0x42b   : > { %583 = vrot.lane.b32.xlu2 %v495_v39, %s791_s15 }
 0x485   : > { %v584_v45 = vpop.permute.xlu2 %583 }
 0x486   : > { %v592_v47 = vsel %vm591_vm2, %v590_v46, %v584_v45 }
 0x494   : > { %v588_v48 = vpop.permute.xlu1 %587 }
 0x495   : > { %v594_v49 = vsel %vm593_vm3, %v592_v47, %v588_v48 }
 0x496   : > { %728 = vmatmul.msk.f32.vlgmr.msra.gmra.mxu1 %vm603_vm4, %v594_v49 }
 0x513   : > { %v624_v51 = vpop.f32.mrf.mxu1 }
 0x514   : > { %v625_v53 = vadd.f32 %v753_v50, %v624_v51 }
 0x516   : > { %v628_v38 = vadd.f32 %v627_v52, %v625_v53 }
 0x518   : > { %629 = vst.msk [vmem:[%s253_s8] sm:$0xff] %vm603_vm4, %v628_v38 }
 0x519 PF: > { %s15_s18 = sadd.s32 1, %s776_s18  }
 0x51a   : > { %p12_p4 = scmp.ge.s32.totalorder %s15_s18, 4  }
 0x51c   :  { %14 = sbr.rel (!%p12_p4) target bundleno = 1 (0x1), region = 76 }

// kernel: decoder_forward.25
= control target key start
LH: loop header
LB: loop body
LE: loop exit
PB: predicated region body
PF: predicated region fallthrough
CT: control target
= control target key end

     0   :  { %vm17_vm0 = vcmask 261120   ;;  %s184_s0 = inlined_call_operand.vmem [shape: f32[16,32], index: 0, kind: input, shape index: {}]   ;;  %s185_s1 = inlined_call_operand.vmem [shape: f32[1,32], index: 1, kind: input, shape index: {}]   ;;  %s186_s2 = inlined_call_operand.vmem [shape: f32[1,32], index: 2, kind: input, shape index: {}]   ;;  %s187_s3 = inlined_call_operand.hbm [shape: f32[16,32], index: 3, kind: output, shape index: {}]  }
   0x1   :  { %v15_v0 = vld [vmem:[%s184_s0] sm:$0xff] }
   0x2   :  { %v18_v1 = vsel %vm17_vm0, %v15_v0, 0.0 }
   0x3   :  { %8 = vsyncpa [#allocation3], 0  ;;  %19 = vadd.xlane.f32.xlu0 %v18_v1  ;;  %v16_v2 = vld [vmem:[%s184_s0 + $0x8] sm:$0xff]  ;;  %v139_v4 = vmov 32.0   ;;  %v105_v35 = vld [vmem:[%s185_s1] ss:$0 sm:$0xff] }
   0x4   :  { %v21_v3 = vsel %vm17_vm0, %v16_v2, 0.0  ;;  %107 = vrcp.f32 %v139_v4  ;;  %v106_v39 = vld [vmem:[%s186_s2] ss:$0 sm:$0xff]  ;;  %s140_s1 = smov [#allocation2]   ;;  %s89_s22 = sshll.u32 %s187_s3, 4  ;;  %s90_s22 = int_to_ptr.hbm [resolvable:$true] %s89_s22 }
   0x5   :  { %s87_s19 = sshll.u32 %s140_s1, 4  ;;  %s141_s2 = smov 128   ;;  %s88_s19 = int_to_ptr.vmem [resolvable:$true] %s87_s19 }
   0x6   :  { %s142_s23 = smov 8  }
   0xa   :  { %v108_v5 = vpop.eup %107 }
   0xb   :  { %22 = vadd.xlane.f32.xlu0 %v21_v3  ;;  %v25_v6 = vmul.f32 32.0, %v108_v5  ;;  %vm29_vm1 = vweird.f32 %v108_v5 }
   0xd   :  { %v26_v7 = vsub.f32 1.0, %v25_v6 }
   0xf   :  { %v27_v8 = vmul.f32 %v108_v5, %v26_v7 }
  0x11   :  { %v28_v9 = vadd.f32 %v108_v5, %v27_v8 }
  0x13   :  { %v30_v10 = vsel %vm29_vm1, %v108_v5, %v28_v9 }
  0x76   :  { %v20_v11 = vpop.xlane.xlu0 %19 }
  0x77   :  { %v31_v12 = vmul.f32 %v30_v10, %v20_v11 }
  0x79   :  { %v33_v13 = vsub.f32 %v15_v0, %v31_v12 }
  0x7b   :  { %v35_v14 = vmul.f32 %v33_v13, %v33_v13 }
  0x7d   :  { %v37_v15 = vsel %vm17_vm0, %v35_v14, 0.0 }
  0x7e   :  { %38 = vadd.xlane.f32.xlu1 %v37_v15  ;;  %v23_v16 = vpop.xlane.xlu0 %22 }
  0x7f   :  { %v32_v17 = vmul.f32 %v30_v10, %v23_v16 }
  0x81   :  { %v34_v18 = vsub.f32 %v16_v2, %v32_v17 }
  0x83   :  { %v36_v19 = vmul.f32 %v34_v18, %v34_v18 }
  0x85   :  { %v40_v20 = vsel %vm17_vm0, %v36_v19, 0.0 }
  0x86   :  { %41 = vadd.xlane.f32.xlu1 %v40_v20 }
  0xf1   :  { %v39_v21 = vpop.xlane.xlu1 %38 }
  0xf2   :  { %v43_v22 = vmul.f32 %v39_v21, %v30_v10 }
  0xf4   :  { %v45_v23 = vadd.f32 1e-06, %v43_v22 }
  0xf6   :  { %109 = vrsqrt.f32 %v45_v23  ;;  %vm53_vm3 = vweird.f32 %v45_v23 }
  0xf9   :  { %v42_v24 = vpop.xlane.xlu1 %41 }
  0xfa   :  { %v44_v25 = vmul.f32 %v42_v24, %v30_v10 }
  0xfc   :  { %v110_v26 = vpop.eup %109  ;;  %v46_v27 = vadd.f32 1e-06, %v44_v25 }
  0xfd   :  { %v48_v28 = vmul.f32 %v110_v26, %v45_v23  ;;  %vm54_vm2 = vweird.f32 %v110_v26 }
  0xfe   :  { %111 = vrsqrt.f32 %v46_v27  ;;  %vm55_vm4 = vmor %vm53_vm3, %vm54_vm2  ;;  %vm63_vm6 = vweird.f32 %v46_v27 }
  0xff   :  { %v49_v29 = vmul.f32 %v110_v26, %v48_v28 }
 0x101   :  { %v50_v30 = vmul.f32 0.5, %v49_v29 }
 0x103   :  { %v51_v31 = vsub.f32 1.5, %v50_v30 }
 0x104   :  { %v112_v32 = vpop.eup %111 }
 0x105   :  { %v52_v33 = vmul.f32 %v110_v26, %v51_v31  ;;  %v58_v34 = vmul.f32 %v112_v32, %v46_v27  ;;  %vm64_vm5 = vweird.f32 %v112_v32 }
 0x106   :  { %vm65_vm7 = vmor %vm63_vm6, %vm64_vm5 }
 0x107   :  { %v56_v36 = vsel %vm55_vm4, %v110_v26, %v52_v33  ;;  %v59_v37 = vmul.f32 %v112_v32, %v58_v34 }
 0x108   :  { %v67_v38 = vmul.f32 %v56_v36, %v33_v13 }
 0x109   :  { %v60_v40 = vmul.f32 0.5, %v59_v37 }
 0x10a   :  { %v73_v41 = vmul.f32 %v105_v35, %v67_v38 }
 0x10b   :  { %v61_v42 = vsub.f32 1.5, %v60_v40 }
 0x10c   :  { %v79_v43 = vadd.f32 %v106_v39, %v73_v41 }
 0x10d   :  { %v62_v44 = vmul.f32 %v112_v32, %v61_v42 }
 0x10e   :  { %81 = vst.msk [vmem:[#allocation2] sm:$0xff] %vm17_vm0, %v79_v43 }
 0x10f   :  { %v66_v45 = vsel %vm65_vm7, %v112_v32, %v62_v44 }
 0x110   :  { %v68_v46 = vmul.f32 %v66_v45, %v34_v18 }
 0x112   :  { %v74_v47 = vmul.f32 %v105_v35, %v68_v46 }
 0x114   :  { %v80_v48 = vadd.f32 %v106_v39, %v74_v47 }
 0x116   :  { %82 = vst.msk [vmem:[#allocation2 + $0x8] sm:$0xff] %vm17_vm0, %v80_v48 }
 0x117   :  { %95 = dma.vmem_to_hbm [thread:$0]  %s88_s19, 256, %s90_s22, [#allocation3], %s141_s2, %s141_s2, %s142_s23  }
 0x118   :  { %137 = dma.done.wait [#allocation3], 256  }
 0x119   :  { %138 = vsyncadd [#allocation3], 4294967040 }
 0x11a   :  { %100 = vsyncpa [#allocation3], 1 }

// kernel: decoder_forward.18
= control target key start
LH: loop header
LB: loop body
LE: loop exit
PB: predicated region body
PF: predicated region fallthrough
CT: control target
= control target key end

     0   :  { %vm28_vm0 = vcmask 261120   ;;  %v208_v4 = vmov 32.0   ;;  %vm143_vm8 = vcmask 523264   ;;  %s337_s0 = inlined_call_operand.vmem [shape: f32[16,32], index: 0, kind: input, shape index: {}]   ;;  %s338_s1 = inlined_call_operand.vmem [shape: f32[1,32], index: 1, kind: input, shape index: {}]   ;;  %s339_s2 = inlined_call_operand.vmem [shape: f32[1,32], index: 2, kind: input, shape index: {}]   ;;  %s340_s4 = inlined_call_operand.vmem [shape: f32[1,64], index: 4, kind: input, shape index: {}]   ;;  %s341_s3 = inlined_call_operand.vmem [shape: f32[32,64], index: 3, kind: input, shape index: {}]   ;;  %s342_s5 = inlined_call_operand.vmem [shape: f32[64,32], index: 5, kind: input, shape index: {}]   ;;  %s343_s6 = inlined_call_operand.vmem [shape: f32[1,32], index: 6, kind: input, shape index: {}]   ;;  %s344_s7 = inlined_call_operand.vmem [shape: f32[16,32], index: 7, kind: output, shape index: {}]  }
   0x1   :  { %v252_v0 = vld [vmem:[%s337_s0 + $0x8] sm:$0xff]  ;;  %v259_v2 = vld [vmem:[%s337_s0] sm:$0xff]  ;;  %202 = vrcp.f32 %v208_v4  ;;  %v95_v21 = vld [vmem:[%s341_s3 + $0x18] sm:$0xff] }
   0x2   :  { %v32_v1 = vsel %vm28_vm0, %v252_v0, 0.0  ;;  %v29_v3 = vsel %vm28_vm0, %v259_v2, 0.0  ;;  %185 = vmatpush.msra.mxu3 %v95_v21  ;;  %118 = vmatpush.msra.mxu0 %v95_v21  ;;  %v94_v22 = vld [vmem:[%s341_s3 + $0x10] sm:$0xff]  ;;  %v93_v23 = vld [vmem:[%s341_s3 + $0x8] sm:$0xff]  ;;  %v92_v24 = vld [vmem:[%s341_s3] sm:$0xff] }
   0x3   :  { %33 = vadd.xlane.f32.xlu0 %v32_v1  ;;  %v138_v28 = vld [vmem:[%s342_s5 + $0x38] sm:$0xff]  ;;  %v137_v29 = vld [vmem:[%s342_s5 + $0x30] sm:$0xff]  ;;  %v136_v30 = vld [vmem:[%s342_s5 + $0x28] sm:$0xff] }
   0x4   :  { %186 = vmatpush.msra.mxu3 %v94_v22  ;;  %119 = vmatpush.msra.mxu0 %v94_v22  ;;  %v135_v33 = vld [vmem:[%s342_s5 + $0x20] sm:$0xff]  ;;  %v134_v36 = vld [vmem:[%s342_s5 + $0x18] sm:$0xff]  ;;  %v133_v58 = vld [vmem:[%s342_s5 + $0x10] sm:$0xff] }
   0x5   :  { %189 = vmatpush.msra.mxu2 %v138_v28  ;;  %158 = vmatpush.msra.mxu1 %v138_v28  ;;  %v198_v44 = vld [vmem:[%s338_s1] ss:$0 sm:$0xff]  ;;  %v132_v59 = vld [vmem:[%s342_s5 + $0x8] sm:$0xff] }
   0x6   :  { %187 = vmatpush.msra.mxu3 %v93_v23  ;;  %120 = vmatpush.msra.mxu0 %v93_v23  ;;  %v199_v48 = vld [vmem:[%s339_s2] ss:$0 sm:$0xff] }
   0x7   :  { %v203_v5 = vpop.eup %202  ;;  %190 = vmatpush.msra.mxu2 %v137_v29  ;;  %159 = vmatpush.msra.mxu1 %v137_v29  ;;  %v131_v60 = vld [vmem:[%s342_s5] sm:$0xff] }
   0x8   :  { %v36_v6 = vmul.f32 32.0, %v203_v5  ;;  %vm40_vm1 = vweird.f32 %v203_v5  ;;  %188 = vmatpush.msra.mxu3 %v92_v24  ;;  %121 = vmatpush.msra.mxu0 %v92_v24  ;;  %v200_v61 = vld [vmem:[%s340_s4] ss:$0 sm:$0xff] }
   0x9   :  { %191 = vmatpush.msra.mxu2 %v136_v30  ;;  %160 = vmatpush.msra.mxu1 %v136_v30 }
   0xa   :  { %v37_v7 = vsub.f32 1.0, %v36_v6  ;;  %v201_v6 = vld [vmem:[%s343_s6] ss:$0 sm:$0xff] }
   0xb   :  { %30 = vadd.xlane.f32.xlu0 %v29_v3  ;;  %192 = vmatpush.msra.mxu2 %v135_v33 }
   0xc   :  { %v38_v8 = vmul.f32 %v203_v5, %v37_v7  ;;  %161 = vmatpush.msra.mxu1 %v135_v33 }
   0xd   :  { %193 = vmatpush.msra.mxu2 %v134_v36 }
   0xe   :  { %v39_v9 = vadd.f32 %v203_v5, %v38_v8  ;;  %162 = vmatpush.msra.mxu1 %v134_v36 }
   0xf   :  { %194 = vmatpush.msra.mxu2 %v133_v58 }
  0x10   :  { %v41_v10 = vsel %vm40_vm1, %v203_v5, %v39_v9  ;;  %163 = vmatpush.msra.mxu1 %v133_v58 }
  0x11   :  { %195 = vmatpush.msra.mxu2 %v132_v59 }
  0x12   :  { %164 = vmatpush.msra.mxu1 %v132_v59 }
  0x13   :  { %196 = vmatpush.msra.mxu2 %v131_v60 }
  0x14   :  { %165 = vmatpush.msra.mxu1 %v131_v60 }
  0x76   :  { %v34_v11 = vpop.xlane.xlu0 %33 }
  0x77   :  { %v43_v12 = vmul.f32 %v41_v10, %v34_v11 }
  0x79   :  { %v264_v13 = vsub.f32 %v252_v0, %v43_v12 }
  0x7b   :  { %v47_v14 = vmul.f32 %v264_v13, %v264_v13 }
  0x7d   :  { %v51_v15 = vsel %vm28_vm0, %v47_v14, 0.0 }
  0x7e   :  { %52 = vadd.xlane.f32.xlu1 %v51_v15  ;;  %v31_v16 = vpop.xlane.xlu0 %30 }
  0x7f   :  { %v42_v17 = vmul.f32 %v41_v10, %v31_v16 }
  0x81   :  { %v270_v18 = vsub.f32 %v259_v2, %v42_v17 }
  0x83   :  { %v46_v19 = vmul.f32 %v270_v18, %v270_v18 }
  0x85   :  { %v48_v20 = vsel %vm28_vm0, %v46_v19, 0.0 }
  0x86   :  { %49 = vadd.xlane.f32.xlu1 %v48_v20 }
  0xf1   :  { %v53_v25 = vpop.xlane.xlu1 %52 }
  0xf2   :  { %v55_v26 = vmul.f32 %v53_v25, %v41_v10 }
  0xf4   :  { %v57_v27 = vadd.f32 1e-06, %v55_v26 }
  0xf6   :  { %204 = vrsqrt.f32 %v57_v27  ;;  %vm74_vm3 = vweird.f32 %v57_v27 }
  0xf9   :  { %v50_v31 = vpop.xlane.xlu1 %49 }
  0xfa   :  { %v54_v32 = vmul.f32 %v50_v31, %v41_v10 }
  0xfc   :  { %v205_v34 = vpop.eup %204  ;;  %v56_v35 = vadd.f32 1e-06, %v54_v32 }
  0xfd   :  { %v69_v37 = vmul.f32 %v205_v34, %v57_v27  ;;  %vm75_vm2 = vweird.f32 %v205_v34 }
  0xfe   :  { %206 = vrsqrt.f32 %v56_v35  ;;  %vm76_vm4 = vmor %vm74_vm3, %vm75_vm2  ;;  %vm64_vm6 = vweird.f32 %v56_v35 }
  0xff   :  { %v70_v38 = vmul.f32 %v205_v34, %v69_v37 }
 0x101   :  { %v71_v39 = vmul.f32 0.5, %v70_v38 }
 0x103   :  { %v72_v40 = vsub.f32 1.5, %v71_v39 }
 0x104   :  { %v207_v41 = vpop.eup %206 }
 0x105   :  { %v73_v42 = vmul.f32 %v205_v34, %v72_v40  ;;  %v59_v43 = vmul.f32 %v207_v41, %v56_v35  ;;  %vm65_vm5 = vweird.f32 %v207_v41 }
 0x106   :  { %vm66_vm7 = vmor %vm64_vm6, %vm65_vm5 }
 0x107   :  { %v77_v45 = vsel %vm76_vm4, %v205_v34, %v73_v42  ;;  %v60_v46 = vmul.f32 %v207_v41, %v59_v43 }
 0x108   :  { %v79_v47 = vmul.f32 %v77_v45, %v264_v13 }
 0x109   :  { %v61_v49 = vmul.f32 0.5, %v60_v46 }
 0x10a   :  { %v85_v50 = vmul.f32 %v198_v44, %v79_v47 }
 0x10b   :  { %v62_v51 = vsub.f32 1.5, %v61_v49 }
 0x10c   :  { %v91_v52 = vadd.f32 %v199_v48, %v85_v50 }
 0x10d   :  { %v63_v53 = vmul.f32 %v207_v41, %v62_v51 }
 0x10e   :  { %182 = vmatmul.msk.f32.vlgmr.msra.gmra.mxu3 %vm28_vm0, %v91_v52 }
 0x10f   :  { %v67_v54 = vsel %vm66_vm7, %v207_v41, %v63_v53 }
 0x110   :  { %v78_v55 = vmul.f32 %v67_v54, %v270_v18 }
 0x112   :  { %v84_v56 = vmul.f32 %v198_v44, %v78_v55 }
 0x114   :  { %v90_v57 = vadd.f32 %v199_v48, %v84_v56 }
 0x116   :  { %181 = vmatmul.msk.f32.vlgmr.msra.gmra.mxu0 %vm28_vm0, %v90_v57 }
 0x191   :  { %v126_v62 = vpop.f32.mrf.mxu3 }
 0x192   :  { %v127_v63 = vadd.f32 %v200_v61, %v126_v62 }
 0x193   :  { %v123_v1 = vpop.f32.mrf.mxu0 }
 0x194   :  { %v130_v3 = vmax.f32 %v127_v63, 0.0  ;;  %v124_v4 = vadd.f32 %v200_v61, %v123_v1 }
 0x196   :  { %v129_v5 = vmax.f32 %v124_v4, 0.0  ;;  %184 = vmatmul.msk.f32.vlgmr.msra.gmra.mxu2 %vm143_vm8, %v130_v3 }
 0x198   :  { %183 = vmatmul.msk.f32.vlgmr.msra.gmra.mxu1 %vm143_vm8, %v129_v5 }
 0x215   :  { %v167_v7 = vpop.f32.mrf.mxu1 }
 0x216   :  { %v168_v8 = vadd.f32 %v201_v6, %v167_v7 }
 0x218   :  { %v173_v9 = vadd.f32 %v168_v8, %v259_v2 }
 0x219   :  { %v170_v10 = vpop.f32.mrf.mxu2 }
 0x21a   :  { %175 = vst.msk [vmem:[%s344_s7] sm:$0xff] %vm28_vm0, %v173_v9  ;;  %v171_v11 = vadd.f32 %v201_v6, %v170_v10 }
 0x21c   :  { %v174_v12 = vadd.f32 %v171_v11, %v252_v0 }
 0x21e   :  { %176 = vst.msk [vmem:[%s344_s7 + $0x8] sm:$0xff] %vm28_vm0, %v174_v12 }

// kernel: decoder_forward.17
= control target key start
LH: loop header
LB: loop body
LE: loop exit
PB: predicated region body
PF: predicated region fallthrough
CT: control target
= control target key end

     0   :  { %s919_s21 = smov 0   ;;  %s1027_s0 = inlined_call_operand.vmem [shape: f32[2,8,32], index: 0, kind: input, shape index: {}]   ;;  %s1028_s1 = inlined_call_operand.vmem [shape: f32[2,10,64], index: 1, kind: input, shape index: {}]   ;;  %s1029_s2 = inlined_call_operand.vmem [shape: f32[2,1,10], index: 2, kind: input, shape index: {}]   ;;  %s1030_s3 = inlined_call_operand.vmem [shape: f32[2,8,32], index: 3, kind: input, shape index: {}]   ;;  %s1031_s4 = inlined_call_operand.vmem [shape: f32[32,32], index: 4, kind: input, shape index: {}]   ;;  %s1032_s5 = inlined_call_operand.vmem [shape: f32[1,32], index: 5, kind: input, shape index: {}]   ;;  %s1033_s6 = inlined_call_operand.vmem [shape: f32[2,8,32], index: 6, kind: output, shape index: {}]  }
   0x1 LB: > { %s797_s22 = sadd.s32 4294967295, %s872_s21   ;;  %p801_p0 = scmp.ge.s32.totalorder %s872_s21, 1  ;;  %s872_s21 = sphi %s919_s21, %s16_s21  }
   0x2   : > { %p238_p1 = scmp.lt.s32.totalorder %s872_s21, 3 }
   0x4   : > { %p239_p2 = pnand %p801_p0, %p238_p1 }
   0x5   : > { %p278_p3 = scmp.lt.s32.totalorder (!%p239_p2), %s797_s22, 1  ;;  %s874_s7 = smov (!%p239_p2), 120  }
   0x6   : > { %242 = sbr.rel (%p239_p2) target bundleno = 1175 (0x497), region = 44  ;;  %s875_s8 = smov (!%p239_p2), 96  }
   0x7   : > { %s876_s9 = smov (!%p239_p2), 104   ;;  %s877_s13 = smov (!%p239_p2), 112  }
   0x8   : > { %s878_s14 = smov (!%p239_p2), 88   ;;  %s879_s15 = smov (!%p239_p2), 72  }
   0x9   : > { %s880_s16 = smov (!%p239_p2), 80   ;;  %s881_s17 = smov (!%p239_p2), 8  }
   0xa   : > { %s882_s18 = smov (!%p239_p2), 24  }
   0xb   : > { %s1035_s22 = smov (!%p278_p3, %s797_s22), 1  ;;  %vm304_vm0 = vcmask 64512   ;;  %vm339_vm1 = vcmask 80896   ;;  %vm372_vm2 = vcmask 1041408  }
   0xc   : > { %s830_s23 = sshll.u32 %s1035_s22, 4  ;;  %s927_s24 = sshll.u32 %s1035_s22, 3 }
   0xd   : > { %s286_s27 = scalar_lea.vmem %s1028_s1, %s830_s23  ;;  %s281_s30 = scalar_lea.vmem %s1027_s0, %s927_s24 }
   0xe   : > { %v936_v0 = vld [vmem:[%s286_s27 + $0x8] sm:$0x3]  ;;  %v298_v1 = vld [vmem:[%s281_s30] sm:$0xff]  ;;  %s289_s12 = scalar_lea.vmem %s1029_s2, %s1035_s22 }
   0xf   : > { %807 = vmatpush.xpose.msk.msra.mxu0 %vm304_vm0, %v936_v0  ;;  %399 = vrot.lane.b32.xlu1 %v936_v0, %s874_s7  ;;  %v941_v2 = vld [vmem:[%s286_s27] sm:$0xff]  ;;  %s883_s27 = smov 16  }
  0x10   : > { %395 = vrot.lane.b32.xlu2 %v298_v1, %s874_s7  ;;  %v301_v6 = vld [vmem:[%s289_s12] sm:$0x1] }
  0x11   : > { %v302_v9 = vsub.f32 1.0, %v301_v6 }
  0x13   : > { %808 = vmatpush.xpose.msk.msra.mxu0 %vm304_vm0, %v941_v2  ;;  %v303_v10 = vmul.f32 -1e+09, %v302_v9 }
  0x15   : > { %v958_v11 = vperm.slane %v303_v10, 0 }
  0x16   : > { %809 = vmatmul.msk.f32.vlgmr.msra.gmra.mxu0 %vm304_vm0, %v298_v1 }
  0x17   : > { %397 = vrot.lane.b32.xlu1 %v941_v2, %s874_s7 }
  0x18   : > { %366 = vrot.lane.b32.xlu2 %v936_v0, %s875_s8 }
  0x1f   : > { %487 = vrot.lane.b32.xlu1 %v936_v0, %s877_s13 }
  0x20   : > { %575 = vrot.lane.b32.xlu2 %v936_v0, %s876_s9 }
  0x27   : > { %485 = vrot.lane.b32.xlu1 %v941_v2, %s877_s13 }
  0x28   : > { %573 = vrot.lane.b32.xlu2 %v941_v2, %s876_s9 }
  0x2f   : > { %483 = vrot.lane.b32.xlu1 %v298_v1, %s877_s13  ;;  %s297_s13 = scalar_lea.vmem %s1033_s6, %s927_s24 }
  0x30   : > { %571 = vrot.lane.b32.xlu2 %v298_v1, %s876_s9 }
  0x6a   : > { %v396_v3 = vpop.permute.xlu2 %395 }
  0x72   : > { %v367_v5 = vpop.permute.xlu2 %366 }
  0x73   : > { %810 = vmatpush.msk.msra.mxu1 %vm372_vm2, %v367_v5 }
  0x7a   : > { %v576_v8 = vpop.permute.xlu2 %575 }
  0x7b   : > { %822 = vmatpush.xpose.msk.msrb.mxu0 %vm304_vm0, %v576_v8 }
  0x81   : > { %v400_v4 = vpop.permute.xlu1 %399 }
  0x82   : > { %812 = vmatpush.xpose.msk.msra.mxu2 %vm304_vm0, %v400_v4  ;;  %v574_v16 = vpop.permute.xlu2 %573 }
  0x83   : > { %823 = vmatpush.xpose.msk.msrb.mxu0 %vm304_vm0, %v574_v16 }
  0x89   : > { %v398_v7 = vpop.permute.xlu1 %397 }
  0x8a   : > { %813 = vmatpush.xpose.msk.msra.mxu2 %vm304_vm0, %v398_v7  ;;  %v572_v17 = vpop.permute.xlu2 %571 }
  0x8b   : > { %824 = vmatmul.msk.f32.vlgmr.msrb.gmra.mxu0 %vm304_vm0, %v572_v17 }
  0x8d   : > { %814 = vmatmul.msk.f32.vlgmr.msra.gmra.mxu2 %vm304_vm0, %v396_v3 }
  0x91   : > { %v488_v32 = vpop.permute.xlu1 %487 }
  0x93   : > { %v331_v12 = vpop.f32.mrf.mxu0 }
  0x94   : > { %v334_v13 = vmul.f32 0.35355338, %v331_v12 }
  0x96   : > { %v338_v14 = vadd.f32 %v958_v11, %v334_v13 }
  0x98   : > { %v340_v15 = vsel %vm339_vm1, %v338_v14, -inf }
  0x99   : > { %341 = vmax.xlane.f32.xlu0 %v340_v15  ;;  %v486_v41 = vpop.permute.xlu1 %485 }
  0xa1   : > { %v484_v46 = vpop.permute.xlu1 %483 }
 0x108   : > { %v600_v27 = vpop.f32.mrf.mxu0 }
 0x109   : > { %v603_v28 = vmul.f32 0.35355338, %v600_v27 }
 0x10b   : > { %v604_v29 = vadd.f32 %v603_v28, %v958_v11 }
 0x10c   : > { %v342_v18 = vpop.xlane.xlu0 %341 }
 0x10d   : > { %v343_v19 = vsub.f32 %v338_v14, %v342_v18  ;;  %v605_v30 = vsel %vm339_vm1, %v604_v29, -inf }
 0x10e   : > { %606 = vmax.xlane.f32.xlu2 %v605_v30 }
 0x10f   : > { %v344_v20 = vmul.f32 1.442695, %v343_v19 }
 0x110   : > { %v424_v23 = vpop.f32.mrf.mxu2 }
 0x111   : > { %850 = vpow2.f32 %v344_v20  ;;  %v427_v24 = vmul.f32 0.35355338, %v424_v23 }
 0x113   : > { %v428_v25 = vadd.f32 %v427_v24, %v958_v11 }
 0x115   : > { %v429_v26 = vsel %vm339_vm1, %v428_v25, -inf }
 0x117   : > { %v851_v21 = vpop.eup %850 }
 0x118   : > { %v346_v22 = vsel %vm339_vm1, %v851_v21, 0.0 }
 0x119   : > { %347 = vadd.xlane.f32.xlu0 %v346_v22 }
 0x126   : > { %453 = vrot.lane.b32.xlu2 %v941_v2, %s878_s14 }
 0x12d   : > { %364 = vrot.lane.b32.xlu0 %v941_v2, %s875_s8  ;;  %s293_s8 = scalar_lea.vmem %s1030_s3, %s927_s24 }
 0x157   : > { %430 = vmax.xlane.f32.xlu0 %v429_v26 }
 0x181   : > { %v607_v53 = vpop.xlane.xlu2 %606 }
 0x182   : > { %v608_v54 = vsub.f32 %v604_v29, %v607_v53 }
 0x184   : > { %v609_v55 = vmul.f32 1.442695, %v608_v54 }
 0x189   : > { %v454_v12 = vpop.permute.xlu2 %453 }
 0x18c   : > { %v348_v31 = vpop.xlane.xlu0 %347 }
 0x18d   : > { %852 = vrcp.f32 %v348_v31  ;;  %v360_v36 = vand.u32 2147483648, %v348_v31  ;;  %v358_v38 = vand.u32 2147483647, %v348_v31  ;;  %vm354_vm4 = vweird.f32 %v348_v31 }
 0x18f   : > { %v361_v40 = vor.u32 1.1754944e-38, %v360_v36  ;;  %vm359_vm6 = vcmp.eq.f32.partialorder %v358_v38, 8.507059e+37 }
 0x193   : > { %v853_v33 = vpop.eup %852 }
 0x194   : > { %v350_v34 = vmul.f32 %v853_v33, %v348_v31  ;;  %vm355_vm3 = vweird.f32 %v853_v33 }
 0x195   : > { %vm356_vm5 = vmor %vm354_vm4, %vm355_vm3 }
 0x196   : > { %v351_v35 = vsub.f32 1.0, %v350_v34 }
 0x198   : > { %v352_v37 = vmul.f32 %v853_v33, %v351_v35 }
 0x19a   : > { %v353_v39 = vadd.f32 %v853_v33, %v352_v37 }
 0x19c   : > { %v357_v42 = vsel %vm356_vm5, %v853_v33, %v353_v39 }
 0x19d   : > { %v362_v43 = vsel %vm359_vm6, %v361_v40, %v357_v42  ;;  %vm684_vm6 = vcmask 261120  }
 0x19e   : > { %v363_v44 = vmul.f32 %v851_v21, %v362_v43 }
 0x19f   : > { %v365_v45 = vpop.permute.xlu0 %364 }
 0x1a0   : > { %390 = vmatpush.msra.mxu1 %v365_v45 }
 0x1a1   : > { %811 = vmatmul.msk.f32.vlgmr.msra.gmra.mxu1 %vm339_vm1, %v363_v44 }
 0x1a2   : > { %817 = vmatpush.xpose.msk.msrb.mxu1 %vm304_vm0, %v488_v32 }
 0x1a6   : > { %818 = vmatpush.xpose.msk.msrb.mxu1 %vm304_vm0, %v486_v41 }
 0x1a9   : > { %819 = vmatmul.msk.f32.vlgmr.msrb.gmra.mxu1 %vm304_vm0, %v484_v46 }
 0x1ca   : > { %v431_v47 = vpop.xlane.xlu0 %430 }
 0x1cb   : > { %v432_v48 = vsub.f32 %v428_v25, %v431_v47  ;;  %v679_v47 = vld [vmem:[%s1031_s4 + $0x18] sm:$0xff] }
 0x1cc   : > { %700 = vmatpush.msra.mxu1 %v679_v47 }
 0x1cd   : > { %v433_v49 = vmul.f32 1.442695, %v432_v48  ;;  %v678_v48 = vld [vmem:[%s1031_s4 + $0x10] sm:$0xff] }
 0x1ce   : > { %701 = vmatpush.msra.mxu1 %v678_v48 }
 0x1cf   : > { %854 = vpow2.f32 %v433_v49  ;;  %v677_v49 = vld [vmem:[%s1031_s4 + $0x8] sm:$0xff] }
 0x1d0   : > { %856 = vpow2.f32 %v609_v55  ;;  %702 = vmatpush.msra.mxu1 %v677_v49 }
 0x1d5   : > { %v855_v50 = vpop.eup %854 }
 0x1d6   : > { %v435_v51 = vsel %vm339_vm1, %v855_v50, 0.0  ;;  %v857_v60 = vpop.eup %856 }
 0x1d7   : > { %436 = vadd.xlane.f32.xlu0 %v435_v51  ;;  %v611_v61 = vsel %vm339_vm1, %v857_v60, 0.0  ;;  %v676_v51 = vld [vmem:[%s1031_s4] sm:$0xff] }
 0x1d8   : > { %703 = vmatpush.msra.mxu1 %v676_v51 }
 0x1eb   : > { %455 = vrot.lane.b32.xlu0 %v936_v0, %s878_s14 }
 0x1f3   : > { %631 = vrot.lane.b32.xlu0 %v936_v0, %s879_s15 }
 0x1fb   : > { %629 = vrot.lane.b32.xlu0 %v941_v2, %s879_s15 }
 0x21e   : > { %v983_v52 = vpop.f32.mrf.mxu1 }
 0x226   : > { %v512_v56 = vpop.f32.mrf.mxu1 }
 0x227   : > { %v515_v57 = vmul.f32 0.35355338, %v512_v56 }
 0x229   : > { %v516_v58 = vadd.f32 %v515_v57, %v958_v11 }
 0x22b   : > { %v517_v59 = vsel %vm339_vm1, %v516_v58, -inf }
 0x22c   : > { %518 = vmax.xlane.f32.xlu1 %v517_v59  ;;  %v849_v59 = vld [vmem:[%s1032_s5] ss:$0 sm:$0xff] }
 0x234   : > { %612 = vadd.xlane.f32.xlu1 %v611_v61  ;;  %v708_v61 = vld [vmem:[%s293_s8] sm:$0xff] }
 0x24a   : > { %v437_v62 = vpop.xlane.xlu0 %436 }
 0x24b   : > { %858 = vrcp.f32 %v437_v62  ;;  %vm443_vm7 = vweird.f32 %v437_v62  ;;  %v449_v4 = vand.u32 2147483648, %v437_v62  ;;  %v447_v5 = vand.u32 2147483647, %v437_v62 }
 0x24d   : > { %543 = vrot.lane.b32.xlu1 %v936_v0, %s880_s16  ;;  %v450_v7 = vor.u32 1.1754944e-38, %v449_v4  ;;  %vm448_vm10 = vcmp.eq.f32.partialorder %v447_v5, 8.507059e+37 }
 0x251   : > { %v859_v63 = vpop.eup %858 }
 0x252   : > { %v439_v1 = vmul.f32 %v859_v63, %v437_v62  ;;  %vm444_vm8 = vweird.f32 %v859_v63 }
 0x253   : > { %vm445_vm9 = vmor %vm443_vm7, %vm444_vm8 }
 0x254   : > { %v440_v3 = vsub.f32 1.0, %v439_v1 }
 0x256   : > { %v441_v6 = vmul.f32 %v859_v63, %v440_v3 }
 0x258   : > { %v442_v8 = vadd.f32 %v859_v63, %v441_v6 }
 0x25a   : > { %v446_v9 = vsel %vm445_vm9, %v859_v63, %v442_v8 }
 0x25b   : > { %v451_v10 = vsel %vm448_vm10, %v450_v7, %v446_v9 }
 0x25c   : > { %v452_v13 = vmul.f32 %v855_v50, %v451_v10 }
 0x25d   : > { %v456_v11 = vpop.permute.xlu0 %455 }
 0x25e   : > { %815 = vmatpush.msk.msra.mxu3 %vm372_vm2, %v456_v11 }
 0x260   : > { %478 = vmatpush.msra.mxu3 %v454_v12 }
 0x261   : > { %816 = vmatmul.msk.f32.vlgmr.msra.gmra.mxu3 %vm339_vm1, %v452_v13 }
 0x265   : > { %v632_v0 = vpop.permute.xlu0 %631 }
 0x266   : > { %825 = vmatpush.msk.msrb.mxu2 %vm372_vm2, %v632_v0 }
 0x26d   : > { %v630_v14 = vpop.permute.xlu0 %629 }
 0x26e   : > { %654 = vmatpush.msrb.mxu2 %v630_v14 }
 0x29f   : > { %v519_v15 = vpop.xlane.xlu1 %518 }
 0x2a0   : > { %v520_v16 = vsub.f32 %v516_v58, %v519_v15 }
 0x2a2   : > { %v521_v17 = vmul.f32 1.442695, %v520_v16 }
 0x2a4   : > { %860 = vpow2.f32 %v521_v17 }
 0x2a7   : > { %v613_v18 = vpop.xlane.xlu1 %612 }
 0x2a8   : > { %862 = vrcp.f32 %v613_v18  ;;  %v625_v24 = vand.u32 2147483648, %v613_v18  ;;  %v623_v26 = vand.u32 2147483647, %v613_v18  ;;  %vm619_vm12 = vweird.f32 %v613_v18 }
 0x2aa   : > { %v861_v19 = vpop.eup %860  ;;  %v626_v28 = vor.u32 1.1754944e-38, %v625_v24  ;;  %vm624_vm14 = vcmp.eq.f32.partialorder %v623_v26, 8.507059e+37 }
 0x2ab   : > { %v523_v20 = vsel %vm339_vm1, %v861_v19, 0.0 }
 0x2ac   : > { %524 = vadd.xlane.f32.xlu2 %v523_v20 }
 0x2ae   : > { %v863_v21 = vpop.eup %862 }
 0x2af   : > { %v615_v22 = vmul.f32 %v863_v21, %v613_v18  ;;  %vm620_vm11 = vweird.f32 %v863_v21 }
 0x2b0   : > { %vm621_vm13 = vmor %vm619_vm12, %vm620_vm11 }
 0x2b1   : > { %v616_v23 = vsub.f32 1.0, %v615_v22 }
 0x2b3   : > { %v617_v25 = vmul.f32 %v863_v21, %v616_v23 }
 0x2b5   : > { %v618_v27 = vadd.f32 %v863_v21, %v617_v25 }
 0x2b7   : > { %v622_v29 = vsel %vm621_vm13, %v863_v21, %v618_v27 }
 0x2b8   : > { %v627_v30 = vsel %vm624_vm14, %v626_v28, %v622_v29 }
 0x2b9   : > { %v628_v31 = vmul.f32 %v857_v60, %v627_v30 }
 0x2bb   : > { %826 = vmatmul.msk.f32.vlgmr.msrb.gmra.mxu2 %vm339_vm1, %v628_v31 }
 0x2bf   : > { %v544_v33 = vpop.permute.xlu1 %543 }
 0x2c0   : > { %820 = vmatpush.msk.msrb.mxu3 %vm372_vm2, %v544_v33  ;;  %vm674_vm2 = vcmask 195584  }
 0x2c4   : > { %541 = vrot.lane.b32.xlu2 %v941_v2, %s880_s16 }
 0x2e4   : > { %v480_v32 = vpop.f32.mrf.mxu3 }
 0x2e5   : > { %660 = vrot.lane.b32.xlu1 %v480_v32, %s881_s17 }
 0x31f   : > { %v525_v34 = vpop.xlane.xlu2 %524 }
 0x320   : > { %864 = vrcp.f32 %v525_v34  ;;  %v537_v39 = vand.u32 2147483648, %v525_v34  ;;  %v535_v41 = vand.u32 2147483647, %v525_v34  ;;  %vm531_vm3 = vweird.f32 %v525_v34 }
 0x322   : > { %v538_v2 = vor.u32 1.1754944e-38, %v537_v39  ;;  %vm536_vm5 = vcmp.eq.f32.partialorder %v535_v41, 8.507059e+37 }
 0x326   : > { %v865_v35 = vpop.eup %864 }
 0x327   : > { %v527_v36 = vmul.f32 %v865_v35, %v525_v34  ;;  %v542_v37 = vpop.permute.xlu2 %541  ;;  %vm532_vm15 = vweird.f32 %v865_v35 }
 0x328   : > { %566 = vmatpush.msrb.mxu3 %v542_v37  ;;  %vm533_vm4 = vmor %vm531_vm3, %vm532_vm15 }
 0x329   : > { %v528_v38 = vsub.f32 1.0, %v527_v36 }
 0x32b   : > { %v529_v40 = vmul.f32 %v865_v35, %v528_v38 }
 0x32d   : > { %v530_v42 = vadd.f32 %v865_v35, %v529_v40 }
 0x32f   : > { %v534_v43 = vsel %vm533_vm4, %v865_v35, %v530_v42 }
 0x330   : > { %v539_v44 = vsel %vm536_vm5, %v538_v2, %v534_v43 }
 0x331   : > { %v540_v45 = vmul.f32 %v861_v19, %v539_v44 }
 0x333   : > { %821 = vmatmul.msk.f32.vlgmr.msrb.gmra.mxu3 %vm339_vm1, %v540_v45  ;;  %vm672_vm1 = vcmask 130048  }
 0x33e   : > { %v656_v46 = vpop.f32.mrf.mxu2 }
 0x33f   : > { %668 = vrot.lane.b32.xlu0 %v656_v46, %s882_s18 }
 0x357   : > { %v661_v53 = vpop.permute.xlu1 %660 }
 0x358   : > { %v671_v54 = vsel %vm304_vm0, %v983_v52, %v661_v53 }
 0x3b1   : > { %v669_v56 = vpop.permute.xlu0 %668 }
 0x3b6   : > { %v568_v50 = vpop.f32.mrf.mxu3 }
 0x3b7   : > { %664 = vrot.lane.b32.xlu2 %v568_v50, %s883_s27 }
 0x411   : > { %v665_v55 = vpop.permute.xlu2 %664 }
 0x412   : > { %v673_v57 = vsel %vm672_vm1, %v671_v54, %v665_v55 }
 0x413   : > { %v675_v58 = vsel %vm674_vm2, %v673_v57, %v669_v56 }
 0x414   : > { %827 = vmatmul.msk.f32.vlgmr.msra.gmra.mxu1 %vm684_vm6, %v675_v58 }
 0x491   : > { %v705_v60 = vpop.f32.mrf.mxu1 }
 0x492   : > { %v706_v62 = vadd.f32 %v849_v59, %v705_v60 }
 0x494   : > { %v709_v52 = vadd.f32 %v708_v61, %v706_v62 }
 0x496   : > { %710 = vst.msk [vmem:[%s297_s13] sm:$0xff] %vm684_vm6, %v709_v52 }
 0x497 PF: > { %s16_s21 = sadd.s32 1, %s872_s21  }
 0x498   : > { %p13_p4 = scmp.ge.s32.totalorder %s16_s21, 4  }
 0x49a   :  { %15 = sbr.rel (!%p13_p4) target bundleno = 1 (0x1), region = 83 }

</bundles_post_ra>
